<compile_context>
chip_gen: v7x
topology: tpu7x:2x2x1
jax: 0.10.0
libtpu: 0.0.40
codegen_flags: <defaults>
</compile_context>

<pallas_src>
import numpy as np
import jax
import jax.numpy as jnp
from jax import lax
from jax.experimental import pallas as pl
from jax.experimental.pallas import tpu as pltpu

# ----------------------------- small config ---------------------------------
B = 2           # batch
T = 4096        # waveform samples per clip
FRAME = 128     # frame length == hop (non-overlapping frames)
NFRAMES = T // FRAME          # 32 time frames
NFREQ = 64                    # DFT bins kept
NMEL = 16                     # mel bins
PATCH = 8                     # patch size (frames x mels), conv kernel = stride = 8
D = 32                        # embed dim ("out_dim" of the encoder)
NHEAD = 4
DH = D // NHEAD               # 8
FFN = 64
NLAYERS = 2
HP = NFRAMES // PATCH         # 4 patches along time
WP = NMEL // PATCH            # 2 patches along mel
SEQ = HP * WP                 # 8 tokens per clip
HS = NHEAD * SEQ              # 32 packed (token, head) rows for attention
FB_MEAN = 15.41663            # BEATs dataset fbank stats (used as constants)
FB_STD = 6.55582
NEG_INF = -1e9

# ------------------- deterministic front-end matrices -----------------------
_n = np.arange(FRAME, dtype=np.float64)[:, None]
_k = np.arange(NFREQ, dtype=np.float64)[None, :]
_cos = np.cos(2.0 * np.pi * _n * _k / FRAME)
_sin = -np.sin(2.0 * np.pi * _n * _k / FRAME)
# lane-dense DFT: one (128, 128) matmul producing [re | im]
TRIG = jnp.asarray(np.concatenate([_cos, _sin], axis=1), jnp.float32)       # (FRAME, 2*NFREQ)
WINDOW = jnp.asarray(
    (0.5 - 0.5 * np.cos(2.0 * np.pi * np.arange(FRAME) / FRAME))[None, :], jnp.float32
)                                                                           # (1, FRAME)
_mel = np.zeros((NFREQ, NMEL), np.float32)
_g = NFREQ // NMEL
for _m in range(NMEL):
    _mel[_m * _g:(_m + 1) * _g, _m] = 1.0 / _g
# doubled mel matrix so  [re^2 | im^2] @ MEL2 == (re^2 + im^2) @ mel
MEL2 = jnp.asarray(np.concatenate([_mel, _mel], axis=0))                    # (2*NFREQ, NMEL)

# ---------------- static 0/1 helper matrices (packed attention) -------------
_r = np.arange(HS)
REP = jnp.asarray((_r[:, None] // NHEAD == np.arange(SEQ)[None, :]).astype(np.float32))   # (HS, SEQ)
SEL = jnp.asarray((np.arange(SEQ)[:, None] == _r[None, :] // NHEAD).astype(np.float32))   # (SEQ, HS)
HMASK = jnp.asarray((np.arange(D)[None, :] // DH == (_r[:, None] % NHEAD)).astype(np.float32))        # (HS, D)
SMASK = jnp.asarray(
    np.where((_r[:, None] % NHEAD) == (_r[None, :] % NHEAD), 0.0, NEG_INF).astype(np.float32))        # (HS, HS)

# ---------------- static helper matrices (patch embedding) ------------------
_rr = np.arange(NFRAMES)
PH = jnp.asarray((np.arange(SEQ)[:, None] // WP == _rr[None, :] // PATCH).astype(np.float32))         # (SEQ, NFRAMES)
_col = np.arange(PATCH * WP * D)
MI = jnp.asarray(((_col[None, :] // (WP * D)) == (_rr[:, None] % PATCH)).astype(np.float32))          # (NFRAMES, PATCH*WP*D)
TSEL = jnp.asarray(
    np.repeat(((np.arange(SEQ) % WP) == 1).astype(np.float32)[:, None], D, axis=1))                   # (SEQ, D)


# ------------------------------- fused kernel --------------------------------
def beats_fused_kernel(wav_ref, trig_ref, mel_ref, win_ref, wg_ref,
                       mi_ref, ph_ref, tsel_ref,
                       bp_ref, gp_ref, bep_ref,
                       rep_ref, sel_ref, hm_ref, smask_ref,
                       wqkv_ref, bqkv_ref, wo_ref, bo_ref,
                       w1_ref, b1_ref, w2_ref, b2_ref,
                       g1_ref, be1_ref, g2_ref, be2_ref,
                       out_ref):
    """Full BEATs-style forward for one batch element; only (1, 1, D) is written."""
    f32 = jnp.float32

    # ---------------- front-end: frames -> normalized log-mel ----------------
    frames = wav_ref[0] * win_ref[...]                                        # (NFRAMES, FRAME)
    dft = jnp.dot(frames, trig_ref[...], preferred_element_type=f32)          # (NFRAMES, 2*NFREQ) = [re | im]
    power2 = dft * dft                                                        # [re^2 | im^2]
    mel = jnp.dot(power2, mel_ref[...], preferred_element_type=f32)           # (NFRAMES, NMEL)
    fb = (jnp.log(mel + 1e-6) - FB_MEAN) * (0.5 / FB_STD)                     # (NFRAMES, NMEL)

    # ------- patch embedding (stride==kernel conv; im2col folded into wg) ----
    # G[r, i*WP*D + wp*D + d] = sum_j fb[r, wp*PATCH + j] * W[i*PATCH + j, d]
    G = jnp.dot(fb, wg_ref[...], preferred_element_type=f32)                  # (NFRAMES, PATCH*WP*D)
    Gm = G * mi_ref[...]                                                      # keep only block i == r % PATCH
    E = Gm[:, 0:WP * D]
    for i in range(1, PATCH):
        E = E + Gm[:, i * WP * D:(i + 1) * WP * D]                            # (NFRAMES, WP*D)
    tokens_both = jnp.dot(ph_ref[...], E, preferred_element_type=f32)         # (SEQ, WP*D)
    lo = tokens_both[:, :D]
    hi = tokens_both[:, D:]
    tok = lo + tsel_ref[...] * (hi - lo) + bp_ref[...]                        # (SEQ, D), token t = hp*WP + wp
    mu = jnp.mean(tok, axis=-1, keepdims=True)
    var = jnp.mean((tok - mu) ** 2, axis=-1, keepdims=True)
    x = (tok - mu) * lax.rsqrt(var + 1e-5) * gp_ref[...] + bep_ref[...]       # (SEQ, D)

    # hoisted packed-attention constants (reused by all layers)
    rep = rep_ref[...]          # (HS, SEQ)  row r = token*NHEAD + head
    sel = sel_ref[...]          # (SEQ, HS)
    hm = hm_ref[...]            # (HS, D)    1 on own head's feature block
    smask = smask_ref[...]      # (HS, HS)   0 on same-head entries, -1e9 otherwise
    scale = 1.0 / float(np.sqrt(DH))

    # -------------------- transformer encoder layers -------------------------
    for l in range(NLAYERS):
        # pre-LN multi-head self-attention (packed over heads, no reshapes)
        mu1 = jnp.mean(x, axis=-1, keepdims=True)
        var1 = jnp.mean((x - mu1) ** 2, axis=-1, keepdims=True)
        xn = (x - mu1) * lax.rsqrt(var1 + 1e-5) * g1_ref[l] + be1_ref[l]

        qkv = jnp.dot(xn, wqkv_ref[l], preferred_element_type=f32) + bqkv_ref[l]   # (SEQ, 3D)
        qkv_big = jnp.dot(rep, qkv, preferred_element_type=f32)                    # (HS, 3D)
        q_big = qkv_big[:, :D] * hm                                                # mask to own head's dims
        k_big = qkv_big[:, D:2 * D]
        v = qkv[:, 2 * D:]                                                         # (SEQ, D)

        # single batched score matmul:  s[r1, r2] = <q_head(r1), k(token(r2))>
        s = lax.dot_general(q_big, k_big, (((1,), (1,)), ((), ())),
                            preferred_element_type=f32) * scale + smask            # (HS, HS)
        s = s - jnp.max(s, axis=-1, keepdims=True)
        p = jnp.exp(s)
        p = p * pl.reciprocal(jnp.sum(p, axis=-1, keepdims=True), approx=False)

        pc = jnp.dot(p, rep, preferred_element_type=f32)                           # (HS, SEQ) per-head probs
        ctx_big = jnp.dot(pc, v, preferred_element_type=f32) * hm                  # (HS, D)
        ctx = jnp.dot(sel, ctx_big, preferred_element_type=f32)                    # (SEQ, D) heads concatenated
        x = x + jnp.dot(ctx, wo_ref[l], preferred_element_type=f32) + bo_ref[l]

        # pre-LN feed-forward
        mu2 = jnp.mean(x, axis=-1, keepdims=True)
        var2 = jnp.mean((x - mu2) ** 2, axis=-1, keepdims=True)
        xn2 = (x - mu2) * lax.rsqrt(var2 + 1e-5) * g2_ref[l] + be2_ref[l]
        h1 = jnp.dot(xn2, w1_ref[l], preferred_element_type=f32) + b1_ref[l]
        # TODO(synk): PyTorch nn.GELU defaults to exact erf; tanh approximation kept here.
        h1 = jax.nn.gelu(h1)
        x = x + jnp.dot(h1, w2_ref[l], preferred_element_type=f32) + b2_ref[l]

    # ------------------------------ mean pool ---------------------------------
    out_ref[0] = jnp.mean(x, axis=0, keepdims=True)                               # (1, D)


# -------------------------------- wrapper -------------------------------------
def _batch_spec(shape):
    ndim = len(shape)
    return pl.BlockSpec((1,) + tuple(shape[1:]), lambda b: (b,) + (0,) * (ndim - 1))


def _full_spec(arr):
    ndim = arr.ndim
    return pl.BlockSpec(arr.shape, lambda b: (0,) * ndim)


def beats_encoder(wav, params):
    """wav: (B, T) float32 in [-1, 1]  ->  emb: (B, D)."""
    bsz = wav.shape[0]
    wav3 = wav.reshape(bsz, NFRAMES, FRAME)

    # Fold the im2col of the patch conv into its weight (done once, on the
    # weight only):  wg[m, i*WP*D + wp*D + d] = W[i*PATCH + j, d]  iff m == wp*PATCH + j
    w_r = params["w_patch"].reshape(PATCH, PATCH, D)
    eye_m = jnp.eye(NMEL, dtype=jnp.float32).reshape(NMEL, WP, PATCH)
    wg = jnp.einsum("mwj,ijd->miwd", eye_m, w_r).reshape(NMEL, PATCH * WP * D)

    inputs = (
        wav3, TRIG, MEL2, WINDOW, wg,
        MI, PH, TSEL,
        params["b_patch"], params["g_patch"], params["be_patch"],
        REP, SEL, HMASK, SMASK,
        params["wqkv"], params["bqkv"], params["wo"], params["bo"],
        params["w1"], params["b1"], params["w2"], params["b2"],
        params["g1"], params["be1"], params["g2"], params["be2"],
    )
    in_specs = [_batch_spec(wav3.shape)] + [_full_spec(a) for a in inputs[1:]]

    out = pl.pallas_call(
        beats_fused_kernel,
        out_shape=jax.ShapeDtypeStruct((bsz, 1, D), jnp.float32),
        grid=(bsz,),
        in_specs=in_specs,
        out_specs=pl.BlockSpec((1, 1, D), lambda b: (b, 0, 0)),
        compiler_params=pltpu.CompilerParams(dimension_semantics=("parallel",)),
    )(*inputs)
    return out.reshape(bsz, D)


# ------------------------------ parameters ------------------------------------
def init_params(key):
    ks = jax.random.split(key, NLAYERS + 1)

    def dense(k, shape, scale=0.02):
        return (scale * jax.random.normal(k, shape)).astype(jnp.float32)

    params = {
        "w_patch": dense(ks[0], (PATCH * PATCH, D)),
        "b_patch": jnp.zeros((1, D), jnp.float32),
        "g_patch": jnp.ones((1, D), jnp.float32),
        "be_patch": jnp.zeros((1, D), jnp.float32),
    }
    wqkv, wo, w1, w2 = [], [], [], []
    for l in range(NLAYERS):
        lk = jax.random.split(ks[l + 1], 4)
        wqkv.append(dense(lk[0], (D, 3 * D)))
        wo.append(dense(lk[1], (D, D)))
        w1.append(dense(lk[2], (D, FFN)))
        w2.append(dense(lk[3], (FFN, D)))
    params.update({
        "wqkv": jnp.stack(wqkv), "bqkv": jnp.zeros((NLAYERS, 1, 3 * D), jnp.float32),
        "wo": jnp.stack(wo),     "bo": jnp.zeros((NLAYERS, 1, D), jnp.float32),
        "w1": jnp.stack(w1),     "b1": jnp.zeros((NLAYERS, 1, FFN), jnp.float32),
        "w2": jnp.stack(w2),     "b2": jnp.zeros((NLAYERS, 1, D), jnp.float32),
        "g1": jnp.ones((NLAYERS, 1, D), jnp.float32),
        "be1": jnp.zeros((NLAYERS, 1, D), jnp.float32),
        "g2": jnp.ones((NLAYERS, 1, D), jnp.float32),
        "be2": jnp.zeros((NLAYERS, 1, D), jnp.float32),
    })
    return params


if __name__ == "__main__":
    key = jax.random.PRNGKey(0)
    k_wav, k_par = jax.random.split(key)
    wav = jax.random.uniform(k_wav, (B, T), jnp.float32, minval=-1.0, maxval=1.0)
    params = init_params(k_par)

    emb = jax.jit(beats_encoder)(wav, params)
    emb = jax.block_until_ready(emb)

    assert emb.shape == (B, D) and emb.dtype == jnp.float32
    assert bool(jnp.all(jnp.isfinite(emb)))
    print("KERNEL_OK")
</pallas_src>

<mosaic_0001>
module attributes {stable_mosaic.version = 11 : i64} {
  func.func @beats_fused_kernel(%arg0: i32, %arg1: memref<1x32x128xf32, #tpu.memory_space<vmem>>, %arg2: memref<128x128xf32, #tpu.memory_space<vmem>>, %arg3: memref<128x16xf32, #tpu.memory_space<vmem>>, %arg4: memref<1x128xf32, #tpu.memory_space<vmem>>, %arg5: memref<16x512xf32, #tpu.memory_space<vmem>>, %arg6: memref<32x512xf32, #tpu.memory_space<vmem>>, %arg7: memref<8x32xf32, #tpu.memory_space<vmem>>, %arg8: memref<8x32xf32, #tpu.memory_space<vmem>>, %arg9: memref<1x32xf32, #tpu.memory_space<vmem>>, %arg10: memref<1x32xf32, #tpu.memory_space<vmem>>, %arg11: memref<1x32xf32, #tpu.memory_space<vmem>>, %arg12: memref<32x8xf32, #tpu.memory_space<vmem>>, %arg13: memref<8x32xf32, #tpu.memory_space<vmem>>, %arg14: memref<32x32xf32, #tpu.memory_space<vmem>>, %arg15: memref<32x32xf32, #tpu.memory_space<vmem>>, %arg16: memref<2x32x96xf32, #tpu.memory_space<vmem>>, %arg17: memref<2x1x96xf32, #tpu.memory_space<vmem>>, %arg18: memref<2x32x32xf32, #tpu.memory_space<vmem>>, %arg19: memref<2x1x32xf32, #tpu.memory_space<vmem>>, %arg20: memref<2x32x64xf32, #tpu.memory_space<vmem>>, %arg21: memref<2x1x64xf32, #tpu.memory_space<vmem>>, %arg22: memref<2x64x32xf32, #tpu.memory_space<vmem>>, %arg23: memref<2x1x32xf32, #tpu.memory_space<vmem>>, %arg24: memref<2x1x32xf32, #tpu.memory_space<vmem>>, %arg25: memref<2x1x32xf32, #tpu.memory_space<vmem>>, %arg26: memref<2x1x32xf32, #tpu.memory_space<vmem>>, %arg27: memref<2x1x32xf32, #tpu.memory_space<vmem>>, %arg28: memref<1x1x32xf32, #tpu.memory_space<vmem>>) attributes {dimension_semantics = [#tpu.dimension_semantics<parallel>], iteration_bounds = array<i64: 2>, scalar_prefetch = 0 : i64, scratch_operands = 0 : i64, tpu.core_type = #tpu.core_type<tc>, window_params = [{transform_indices = @transform_0, window_bounds = array<i64: 1, 32, 128>}, {pipeline_mode = #tpu.pipeline_mode<synchronous>, transform_indices = @transform_1, window_bounds = array<i64: 128, 128>}, {pipeline_mode = #tpu.pipeline_mode<synchronous>, transform_indices = @transform_2, window_bounds = array<i64: 128, 16>}, {pipeline_mode = #tpu.pipeline_mode<synchronous>, transform_indices = @transform_3, window_bounds = array<i64: 1, 128>}, {pipeline_mode = #tpu.pipeline_mode<synchronous>, transform_indices = @transform_4, window_bounds = array<i64: 16, 512>}, {pipeline_mode = #tpu.pipeline_mode<synchronous>, transform_indices = @transform_5, window_bounds = array<i64: 32, 512>}, {pipeline_mode = #tpu.pipeline_mode<synchronous>, transform_indices = @transform_6, window_bounds = array<i64: 8, 32>}, {pipeline_mode = #tpu.pipeline_mode<synchronous>, transform_indices = @transform_7, window_bounds = array<i64: 8, 32>}, {pipeline_mode = #tpu.pipeline_mode<synchronous>, transform_indices = @transform_8, window_bounds = array<i64: 1, 32>}, {pipeline_mode = #tpu.pipeline_mode<synchronous>, transform_indices = @transform_9, window_bounds = array<i64: 1, 32>}, {pipeline_mode = #tpu.pipeline_mode<synchronous>, transform_indices = @transform_10, window_bounds = array<i64: 1, 32>}, {pipeline_mode = #tpu.pipeline_mode<synchronous>, transform_indices = @transform_11, window_bounds = array<i64: 32, 8>}, {pipeline_mode = #tpu.pipeline_mode<synchronous>, transform_indices = @transform_12, window_bounds = array<i64: 8, 32>}, {pipeline_mode = #tpu.pipeline_mode<synchronous>, transform_indices = @transform_13, window_bounds = array<i64: 32, 32>}, {pipeline_mode = #tpu.pipeline_mode<synchronous>, transform_indices = @transform_14, window_bounds = array<i64: 32, 32>}, {pipeline_mode = #tpu.pipeline_mode<synchronous>, transform_indices = @transform_15, window_bounds = array<i64: 2, 32, 96>}, {pipeline_mode = #tpu.pipeline_mode<synchronous>, transform_indices = @transform_16, window_bounds = array<i64: 2, 1, 96>}, {pipeline_mode = #tpu.pipeline_mode<synchronous>, transform_indices = @transform_17, window_bounds = array<i64: 2, 32, 32>}, {pipeline_mode = #tpu.pipeline_mode<synchronous>, transform_indices = @transform_18, window_bounds = array<i64: 2, 1, 32>}, {pipeline_mode = #tpu.pipeline_mode<synchronous>, transform_indices = @transform_19, window_bounds = array<i64: 2, 32, 64>}, {pipeline_mode = #tpu.pipeline_mode<synchronous>, transform_indices = @transform_20, window_bounds = array<i64: 2, 1, 64>}, {pipeline_mode = #tpu.pipeline_mode<synchronous>, transform_indices = @transform_21, window_bounds = array<i64: 2, 64, 32>}, {pipeline_mode = #tpu.pipeline_mode<synchronous>, transform_indices = @transform_22, window_bounds = array<i64: 2, 1, 32>}, {pipeline_mode = #tpu.pipeline_mode<synchronous>, transform_indices = @transform_23, window_bounds = array<i64: 2, 1, 32>}, {pipeline_mode = #tpu.pipeline_mode<synchronous>, transform_indices = @transform_24, window_bounds = array<i64: 2, 1, 32>}, {pipeline_mode = #tpu.pipeline_mode<synchronous>, transform_indices = @transform_25, window_bounds = array<i64: 2, 1, 32>}, {pipeline_mode = #tpu.pipeline_mode<synchronous>, transform_indices = @transform_26, window_bounds = array<i64: 2, 1, 32>}, {transform_indices = @transform_27, window_bounds = array<i64: 1, 1, 32>}]} {
    %c0 = arith.constant 0 : index
    %c0_0 = arith.constant 0 : index
    %c0_1 = arith.constant 0 : index
    %0 = vector.load %arg1[%c0, %c0_0, %c0_1] : memref<1x32x128xf32, #tpu.memory_space<vmem>>, vector<1x32x128xf32>
    %1 = vector.shape_cast %0 : vector<1x32x128xf32> to vector<32x128xf32>
    %c0_2 = arith.constant 0 : index
    %c0_3 = arith.constant 0 : index
    %2 = vector.load %arg4[%c0_2, %c0_3] : memref<1x128xf32, #tpu.memory_space<vmem>>, vector<1x128xf32>
    %3 = vector.broadcast %2 : vector<1x128xf32> to vector<32x128xf32>
    %4 = arith.mulf %1, %3 : vector<32x128xf32>
    %c0_4 = arith.constant 0 : index
    %c0_5 = arith.constant 0 : index
    %5 = vector.load %arg2[%c0_4, %c0_5] : memref<128x128xf32, #tpu.memory_space<vmem>>, vector<128x128xf32>
    %cst = arith.constant dense<0.000000e+00> : vector<32x128xf32>
    %6 = tpu.matmul %4, %5, %cst {dimension_numbers = #tpu.dot_dimension_numbers<[1], [0], [0], [1], [0, 0, 1, 1], [], []>} : vector<32x128xf32>, vector<128x128xf32>, vector<32x128xf32> -> vector<32x128xf32>
    %7 = arith.mulf %6, %6 : vector<32x128xf32>
    %c0_6 = arith.constant 0 : index
    %c0_7 = arith.constant 0 : index
    %8 = vector.load %arg3[%c0_6, %c0_7] : memref<128x16xf32, #tpu.memory_space<vmem>>, vector<128x16xf32>
    %cst_8 = arith.constant dense<0.000000e+00> : vector<32x16xf32>
    %9 = tpu.matmul %7, %8, %cst_8 {dimension_numbers = #tpu.dot_dimension_numbers<[1], [0], [0], [1], [0, 0, 1, 1], [], []>} : vector<32x128xf32>, vector<128x16xf32>, vector<32x16xf32> -> vector<32x16xf32>
    %cst_9 = arith.constant 9.99999997E-7 : f32
    %10 = vector.broadcast %cst_9 : f32 to vector<32x16xf32>
    %11 = arith.addf %9, %10 : vector<32x16xf32>
    %12 = math.log %11 : vector<32x16xf32>
    %cst_10 = arith.constant 15.4166298 : f32
    %13 = vector.broadcast %cst_10 : f32 to vector<32x16xf32>
    %14 = arith.subf %12, %13 : vector<32x16xf32>
    %cst_11 = arith.constant 0.0762681066 : f32
    %15 = vector.broadcast %cst_11 : f32 to vector<32x16xf32>
    %16 = arith.mulf %14, %15 : vector<32x16xf32>
    %c0_12 = arith.constant 0 : index
    %c0_13 = arith.constant 0 : index
    %17 = vector.load %arg5[%c0_12, %c0_13] : memref<16x512xf32, #tpu.memory_space<vmem>>, vector<16x512xf32>
    %cst_14 = arith.constant dense<0.000000e+00> : vector<32x512xf32>
    %18 = tpu.matmul %16, %17, %cst_14 {dimension_numbers = #tpu.dot_dimension_numbers<[1], [0], [0], [1], [0, 0, 1, 1], [], []>} : vector<32x16xf32>, vector<16x512xf32>, vector<32x512xf32> -> vector<32x512xf32>
    %c0_15 = arith.constant 0 : index
    %c0_16 = arith.constant 0 : index
    %19 = vector.load %arg6[%c0_15, %c0_16] : memref<32x512xf32, #tpu.memory_space<vmem>>, vector<32x512xf32>
    %20 = arith.mulf %18, %19 : vector<32x512xf32>
    %21 = vector.extract_strided_slice %20 {offsets = [0, 0], sizes = [32, 64], strides = [1, 1]} : vector<32x512xf32> to vector<32x64xf32>
    %22 = vector.extract_strided_slice %20 {offsets = [0, 64], sizes = [32, 64], strides = [1, 1]} : vector<32x512xf32> to vector<32x64xf32>
    %23 = arith.addf %21, %22 : vector<32x64xf32>
    %24 = vector.extract_strided_slice %20 {offsets = [0, 128], sizes = [32, 64], strides = [1, 1]} : vector<32x512xf32> to vector<32x64xf32>
    %25 = arith.addf %23, %24 : vector<32x64xf32>
    %26 = vector.extract_strided_slice %20 {offsets = [0, 192], sizes = [32, 64], strides = [1, 1]} : vector<32x512xf32> to vector<32x64xf32>
    %27 = arith.addf %25, %26 : vector<32x64xf32>
    %28 = vector.extract_strided_slice %20 {offsets = [0, 256], sizes = [32, 64], strides = [1, 1]} : vector<32x512xf32> to vector<32x64xf32>
    %29 = arith.addf %27, %28 : vector<32x64xf32>
    %30 = vector.extract_strided_slice %20 {offsets = [0, 320], sizes = [32, 64], strides = [1, 1]} : vector<32x512xf32> to vector<32x64xf32>
    %31 = arith.addf %29, %30 : vector<32x64xf32>
    %32 = vector.extract_strided_slice %20 {offsets = [0, 384], sizes = [32, 64], strides = [1, 1]} : vector<32x512xf32> to vector<32x64xf32>
    %33 = arith.addf %31, %32 : vector<32x64xf32>
    %34 = vector.extract_strided_slice %20 {offsets = [0, 448], sizes = [32, 64], strides = [1, 1]} : vector<32x512xf32> to vector<32x64xf32>
    %35 = arith.addf %33, %34 : vector<32x64xf32>
    %c0_17 = arith.constant 0 : index
    %c0_18 = arith.constant 0 : index
    %36 = vector.load %arg7[%c0_17, %c0_18] : memref<8x32xf32, #tpu.memory_space<vmem>>, vector<8x32xf32>
    %cst_19 = arith.constant dense<0.000000e+00> : vector<8x64xf32>
    %37 = tpu.matmul %36, %35, %cst_19 {dimension_numbers = #tpu.dot_dimension_numbers<[1], [0], [0], [1], [0, 0, 1, 1], [], []>} : vector<8x32xf32>, vector<32x64xf32>, vector<8x64xf32> -> vector<8x64xf32>
    %38 = vector.extract_strided_slice %37 {offsets = [0, 0], sizes = [8, 32], strides = [1, 1]} : vector<8x64xf32> to vector<8x32xf32>
    %39 = vector.extract_strided_slice %37 {offsets = [0, 32], sizes = [8, 32], strides = [1, 1]} : vector<8x64xf32> to vector<8x32xf32>
    %c0_20 = arith.constant 0 : index
    %c0_21 = arith.constant 0 : index
    %40 = vector.load %arg8[%c0_20, %c0_21] : memref<8x32xf32, #tpu.memory_space<vmem>>, vector<8x32xf32>
    %41 = arith.subf %39, %38 : vector<8x32xf32>
    %42 = arith.mulf %40, %41 : vector<8x32xf32>
    %43 = arith.addf %38, %42 : vector<8x32xf32>
    %c0_22 = arith.constant 0 : index
    %c0_23 = arith.constant 0 : index
    %44 = vector.load %arg9[%c0_22, %c0_23] : memref<1x32xf32, #tpu.memory_space<vmem>>, vector<1x32xf32>
    %45 = vector.broadcast %44 : vector<1x32xf32> to vector<8x32xf32>
    %46 = arith.addf %43, %45 : vector<8x32xf32>
    %cst_24 = arith.constant dense<0.000000e+00> : vector<8xf32>
    %47 = vector.multi_reduction <add>, %46, %cst_24 [1] : vector<8x32xf32> to vector<8xf32>
    %48 = vector.shape_cast %47 : vector<8xf32> to vector<8x1xf32>
    %cst_25 = arith.constant 3.200000e+01 : f32
    %49 = vector.broadcast %cst_25 : f32 to vector<8x1xf32>
    %50 = arith.divf %48, %49 : vector<8x1xf32>
    %51 = vector.broadcast %50 : vector<8x1xf32> to vector<8x32xf32>
    %52 = arith.subf %46, %51 : vector<8x32xf32>
    %53 = arith.mulf %52, %52 : vector<8x32xf32>
    %cst_26 = arith.constant dense<0.000000e+00> : vector<8xf32>
    %54 = vector.multi_reduction <add>, %53, %cst_26 [1] : vector<8x32xf32> to vector<8xf32>
    %55 = vector.shape_cast %54 : vector<8xf32> to vector<8x1xf32>
    %cst_27 = arith.constant 3.200000e+01 : f32
    %56 = vector.broadcast %cst_27 : f32 to vector<8x1xf32>
    %57 = arith.divf %55, %56 : vector<8x1xf32>
    %58 = vector.broadcast %50 : vector<8x1xf32> to vector<8x32xf32>
    %59 = arith.subf %46, %58 : vector<8x32xf32>
    %cst_28 = arith.constant 9.99999974E-6 : f32
    %60 = vector.broadcast %cst_28 : f32 to vector<8x1xf32>
    %61 = arith.addf %57, %60 : vector<8x1xf32>
    %62 = math.rsqrt %61 : vector<8x1xf32>
    %63 = vector.broadcast %62 : vector<8x1xf32> to vector<8x32xf32>
    %64 = arith.mulf %59, %63 : vector<8x32xf32>
    %c0_29 = arith.constant 0 : index
    %c0_30 = arith.constant 0 : index
    %65 = vector.load %arg10[%c0_29, %c0_30] : memref<1x32xf32, #tpu.memory_space<vmem>>, vector<1x32xf32>
    %66 = vector.broadcast %65 : vector<1x32xf32> to vector<8x32xf32>
    %67 = arith.mulf %64, %66 : vector<8x32xf32>
    %c0_31 = arith.constant 0 : index
    %c0_32 = arith.constant 0 : index
    %68 = vector.load %arg11[%c0_31, %c0_32] : memref<1x32xf32, #tpu.memory_space<vmem>>, vector<1x32xf32>
    %69 = vector.broadcast %68 : vector<1x32xf32> to vector<8x32xf32>
    %70 = arith.addf %67, %69 : vector<8x32xf32>
    %c0_33 = arith.constant 0 : index
    %c0_34 = arith.constant 0 : index
    %71 = vector.load %arg12[%c0_33, %c0_34] : memref<32x8xf32, #tpu.memory_space<vmem>>, vector<32x8xf32>
    %c0_35 = arith.constant 0 : index
    %c0_36 = arith.constant 0 : index
    %72 = vector.load %arg13[%c0_35, %c0_36] : memref<8x32xf32, #tpu.memory_space<vmem>>, vector<8x32xf32>
    %c0_37 = arith.constant 0 : index
    %c0_38 = arith.constant 0 : index
    %73 = vector.load %arg14[%c0_37, %c0_38] : memref<32x32xf32, #tpu.memory_space<vmem>>, vector<32x32xf32>
    %c0_39 = arith.constant 0 : index
    %c0_40 = arith.constant 0 : index
    %74 = vector.load %arg15[%c0_39, %c0_40] : memref<32x32xf32, #tpu.memory_space<vmem>>, vector<32x32xf32>
    %cst_41 = arith.constant dense<0.000000e+00> : vector<8xf32>
    %75 = vector.multi_reduction <add>, %70, %cst_41 [1] : vector<8x32xf32> to vector<8xf32>
    %76 = vector.shape_cast %75 : vector<8xf32> to vector<8x1xf32>
    %cst_42 = arith.constant 3.200000e+01 : f32
    %77 = vector.broadcast %cst_42 : f32 to vector<8x1xf32>
    %78 = arith.divf %76, %77 : vector<8x1xf32>
    %79 = vector.broadcast %78 : vector<8x1xf32> to vector<8x32xf32>
    %80 = arith.subf %70, %79 : vector<8x32xf32>
    %81 = arith.mulf %80, %80 : vector<8x32xf32>
    %cst_43 = arith.constant dense<0.000000e+00> : vector<8xf32>
    %82 = vector.multi_reduction <add>, %81, %cst_43 [1] : vector<8x32xf32> to vector<8xf32>
    %83 = vector.shape_cast %82 : vector<8xf32> to vector<8x1xf32>
    %cst_44 = arith.constant 3.200000e+01 : f32
    %84 = vector.broadcast %cst_44 : f32 to vector<8x1xf32>
    %85 = arith.divf %83, %84 : vector<8x1xf32>
    %86 = vector.broadcast %78 : vector<8x1xf32> to vector<8x32xf32>
    %87 = arith.subf %70, %86 : vector<8x32xf32>
    %cst_45 = arith.constant 9.99999974E-6 : f32
    %88 = vector.broadcast %cst_45 : f32 to vector<8x1xf32>
    %89 = arith.addf %85, %88 : vector<8x1xf32>
    %90 = math.rsqrt %89 : vector<8x1xf32>
    %91 = vector.broadcast %90 : vector<8x1xf32> to vector<8x32xf32>
    %92 = arith.mulf %87, %91 : vector<8x32xf32>
    %c0_46 = arith.constant 0 : index
    %c0_47 = arith.constant 0 : index
    %c0_48 = arith.constant 0 : index
    %93 = vector.load %arg24[%c0_46, %c0_47, %c0_48] : memref<2x1x32xf32, #tpu.memory_space<vmem>>, vector<1x1x32xf32>
    %94 = vector.shape_cast %93 : vector<1x1x32xf32> to vector<1x32xf32>
    %95 = vector.broadcast %94 : vector<1x32xf32> to vector<8x32xf32>
    %96 = arith.mulf %92, %95 : vector<8x32xf32>
    %c0_49 = arith.constant 0 : index
    %c0_50 = arith.constant 0 : index
    %c0_51 = arith.constant 0 : index
    %97 = vector.load %arg25[%c0_49, %c0_50, %c0_51] : memref<2x1x32xf32, #tpu.memory_space<vmem>>, vector<1x1x32xf32>
    %98 = vector.shape_cast %97 : vector<1x1x32xf32> to vector<1x32xf32>
    %99 = vector.broadcast %98 : vector<1x32xf32> to vector<8x32xf32>
    %100 = arith.addf %96, %99 : vector<8x32xf32>
    %c0_52 = arith.constant 0 : index
    %c0_53 = arith.constant 0 : index
    %c0_54 = arith.constant 0 : index
    %101 = vector.load %arg16[%c0_52, %c0_53, %c0_54] : memref<2x32x96xf32, #tpu.memory_space<vmem>>, vector<1x32x96xf32>
    %102 = vector.shape_cast %101 : vector<1x32x96xf32> to vector<32x96xf32>
    %cst_55 = arith.constant dense<0.000000e+00> : vector<8x96xf32>
    %103 = tpu.matmul %100, %102, %cst_55 {dimension_numbers = #tpu.dot_dimension_numbers<[1], [0], [0], [1], [0, 0, 1, 1], [], []>} : vector<8x32xf32>, vector<32x96xf32>, vector<8x96xf32> -> vector<8x96xf32>
    %c0_56 = arith.constant 0 : index
    %c0_57 = arith.constant 0 : index
    %c0_58 = arith.constant 0 : index
    %104 = vector.load %arg17[%c0_56, %c0_57, %c0_58] : memref<2x1x96xf32, #tpu.memory_space<vmem>>, vector<1x1x96xf32>
    %105 = vector.shape_cast %104 : vector<1x1x96xf32> to vector<1x96xf32>
    %106 = vector.broadcast %105 : vector<1x96xf32> to vector<8x96xf32>
    %107 = arith.addf %103, %106 : vector<8x96xf32>
    %cst_59 = arith.constant dense<0.000000e+00> : vector<32x96xf32>
    %108 = tpu.matmul %71, %107, %cst_59 {dimension_numbers = #tpu.dot_dimension_numbers<[1], [0], [0], [1], [0, 0, 1, 1], [], []>} : vector<32x8xf32>, vector<8x96xf32>, vector<32x96xf32> -> vector<32x96xf32>
    %109 = vector.extract_strided_slice %108 {offsets = [0, 0], sizes = [32, 32], strides = [1, 1]} : vector<32x96xf32> to vector<32x32xf32>
    %110 = arith.mulf %109, %73 : vector<32x32xf32>
    %111 = vector.extract_strided_slice %108 {offsets = [0, 32], sizes = [32, 32], strides = [1, 1]} : vector<32x96xf32> to vector<32x32xf32>
    %112 = vector.extract_strided_slice %107 {offsets = [0, 64], sizes = [8, 32], strides = [1, 1]} : vector<8x96xf32> to vector<8x32xf32>
    %cst_60 = arith.constant dense<0.000000e+00> : vector<32x32xf32>
    %113 = tpu.matmul %110, %111, %cst_60 {dimension_numbers = #tpu.dot_dimension_numbers<[1], [1], [0], [0], [0, 0, 1, 0], [], []>} : vector<32x32xf32>, vector<32x32xf32>, vector<32x32xf32> -> vector<32x32xf32>
    %cst_61 = arith.constant 0.353553385 : f32
    %114 = vector.broadcast %cst_61 : f32 to vector<32x32xf32>
    %115 = arith.mulf %113, %114 : vector<32x32xf32>
    %116 = arith.addf %115, %74 : vector<32x32xf32>
    %cst_62 = arith.constant dense<0xFF800000> : vector<32xf32>
    %117 = vector.multi_reduction <maximumf>, %116, %cst_62 [1] : vector<32x32xf32> to vector<32xf32>
    %118 = vector.shape_cast %117 : vector<32xf32> to vector<32x1xf32>
    %119 = vector.broadcast %118 : vector<32x1xf32> to vector<32x32xf32>
    %120 = arith.subf %116, %119 : vector<32x32xf32>
    %121 = math.exp %120 : vector<32x32xf32>
    %cst_63 = arith.constant dense<0.000000e+00> : vector<32xf32>
    %122 = vector.multi_reduction <add>, %121, %cst_63 [1] : vector<32x32xf32> to vector<32xf32>
    %123 = vector.shape_cast %122 : vector<32xf32> to vector<32x1xf32>
    %124 = tpu.reciprocal %123 : vector<32x1xf32> -> vector<32x1xf32>
    %125 = vector.broadcast %124 : vector<32x1xf32> to vector<32x32xf32>
    %126 = arith.mulf %121, %125 : vector<32x32xf32>
    %cst_64 = arith.constant dense<0.000000e+00> : vector<32x8xf32>
    %127 = tpu.matmul %126, %71, %cst_64 {dimension_numbers = #tpu.dot_dimension_numbers<[1], [0], [0], [1], [0, 0, 1, 1], [], []>} : vector<32x32xf32>, vector<32x8xf32>, vector<32x8xf32> -> vector<32x8xf32>
    %cst_65 = arith.constant dense<0.000000e+00> : vector<32x32xf32>
    %128 = tpu.matmul %127, %112, %cst_65 {dimension_numbers = #tpu.dot_dimension_numbers<[1], [0], [0], [1], [0, 0, 1, 1], [], []>} : vector<32x8xf32>, vector<8x32xf32>, vector<32x32xf32> -> vector<32x32xf32>
    %129 = arith.mulf %128, %73 : vector<32x32xf32>
    %cst_66 = arith.constant dense<0.000000e+00> : vector<8x32xf32>
    %130 = tpu.matmul %72, %129, %cst_66 {dimension_numbers = #tpu.dot_dimension_numbers<[1], [0], [0], [1], [0, 0, 1, 1], [], []>} : vector<8x32xf32>, vector<32x32xf32>, vector<8x32xf32> -> vector<8x32xf32>
    %c0_67 = arith.constant 0 : index
    %c0_68 = arith.constant 0 : index
    %c0_69 = arith.constant 0 : index
    %131 = vector.load %arg18[%c0_67, %c0_68, %c0_69] : memref<2x32x32xf32, #tpu.memory_space<vmem>>, vector<1x32x32xf32>
    %132 = vector.shape_cast %131 : vector<1x32x32xf32> to vector<32x32xf32>
    %cst_70 = arith.constant dense<0.000000e+00> : vector<8x32xf32>
    %133 = tpu.matmul %130, %132, %cst_70 {dimension_numbers = #tpu.dot_dimension_numbers<[1], [0], [0], [1], [0, 0, 1, 1], [], []>} : vector<8x32xf32>, vector<32x32xf32>, vector<8x32xf32> -> vector<8x32xf32>
    %134 = arith.addf %70, %133 : vector<8x32xf32>
    %c0_71 = arith.constant 0 : index
    %c0_72 = arith.constant 0 : index
    %c0_73 = arith.constant 0 : index
    %135 = vector.load %arg19[%c0_71, %c0_72, %c0_73] : memref<2x1x32xf32, #tpu.memory_space<vmem>>, vector<1x1x32xf32>
    %136 = vector.shape_cast %135 : vector<1x1x32xf32> to vector<1x32xf32>
    %137 = vector.broadcast %136 : vector<1x32xf32> to vector<8x32xf32>
    %138 = arith.addf %134, %137 : vector<8x32xf32>
    %cst_74 = arith.constant dense<0.000000e+00> : vector<8xf32>
    %139 = vector.multi_reduction <add>, %138, %cst_74 [1] : vector<8x32xf32> to vector<8xf32>
    %140 = vector.shape_cast %139 : vector<8xf32> to vector<8x1xf32>
    %cst_75 = arith.constant 3.200000e+01 : f32
    %141 = vector.broadcast %cst_75 : f32 to vector<8x1xf32>
    %142 = arith.divf %140, %141 : vector<8x1xf32>
    %143 = vector.broadcast %142 : vector<8x1xf32> to vector<8x32xf32>
    %144 = arith.subf %138, %143 : vector<8x32xf32>
    %145 = arith.mulf %144, %144 : vector<8x32xf32>
    %cst_76 = arith.constant dense<0.000000e+00> : vector<8xf32>
    %146 = vector.multi_reduction <add>, %145, %cst_76 [1] : vector<8x32xf32> to vector<8xf32>
    %147 = vector.shape_cast %146 : vector<8xf32> to vector<8x1xf32>
    %cst_77 = arith.constant 3.200000e+01 : f32
    %148 = vector.broadcast %cst_77 : f32 to vector<8x1xf32>
    %149 = arith.divf %147, %148 : vector<8x1xf32>
    %150 = vector.broadcast %142 : vector<8x1xf32> to vector<8x32xf32>
    %151 = arith.subf %138, %150 : vector<8x32xf32>
    %cst_78 = arith.constant 9.99999974E-6 : f32
    %152 = vector.broadcast %cst_78 : f32 to vector<8x1xf32>
    %153 = arith.addf %149, %152 : vector<8x1xf32>
    %154 = math.rsqrt %153 : vector<8x1xf32>
    %155 = vector.broadcast %154 : vector<8x1xf32> to vector<8x32xf32>
    %156 = arith.mulf %151, %155 : vector<8x32xf32>
    %c0_79 = arith.constant 0 : index
    %c0_80 = arith.constant 0 : index
    %c0_81 = arith.constant 0 : index
    %157 = vector.load %arg26[%c0_79, %c0_80, %c0_81] : memref<2x1x32xf32, #tpu.memory_space<vmem>>, vector<1x1x32xf32>
    %158 = vector.shape_cast %157 : vector<1x1x32xf32> to vector<1x32xf32>
    %159 = vector.broadcast %158 : vector<1x32xf32> to vector<8x32xf32>
    %160 = arith.mulf %156, %159 : vector<8x32xf32>
    %c0_82 = arith.constant 0 : index
    %c0_83 = arith.constant 0 : index
    %c0_84 = arith.constant 0 : index
    %161 = vector.load %arg27[%c0_82, %c0_83, %c0_84] : memref<2x1x32xf32, #tpu.memory_space<vmem>>, vector<1x1x32xf32>
    %162 = vector.shape_cast %161 : vector<1x1x32xf32> to vector<1x32xf32>
    %163 = vector.broadcast %162 : vector<1x32xf32> to vector<8x32xf32>
    %164 = arith.addf %160, %163 : vector<8x32xf32>
    %c0_85 = arith.constant 0 : index
    %c0_86 = arith.constant 0 : index
    %c0_87 = arith.constant 0 : index
    %165 = vector.load %arg20[%c0_85, %c0_86, %c0_87] : memref<2x32x64xf32, #tpu.memory_space<vmem>>, vector<1x32x64xf32>
    %166 = vector.shape_cast %165 : vector<1x32x64xf32> to vector<32x64xf32>
    %cst_88 = arith.constant dense<0.000000e+00> : vector<8x64xf32>
    %167 = tpu.matmul %164, %166, %cst_88 {dimension_numbers = #tpu.dot_dimension_numbers<[1], [0], [0], [1], [0, 0, 1, 1], [], []>} : vector<8x32xf32>, vector<32x64xf32>, vector<8x64xf32> -> vector<8x64xf32>
    %c0_89 = arith.constant 0 : index
    %c0_90 = arith.constant 0 : index
    %c0_91 = arith.constant 0 : index
    %168 = vector.load %arg21[%c0_89, %c0_90, %c0_91] : memref<2x1x64xf32, #tpu.memory_space<vmem>>, vector<1x1x64xf32>
    %169 = vector.shape_cast %168 : vector<1x1x64xf32> to vector<1x64xf32>
    %170 = vector.broadcast %169 : vector<1x64xf32> to vector<8x64xf32>
    %171 = arith.addf %167, %170 : vector<8x64xf32>
    %172 = arith.mulf %171, %171 : vector<8x64xf32>
    %173 = arith.mulf %171, %172 : vector<8x64xf32>
    %cst_92 = arith.constant 4.471500e-02 : f32
    %174 = vector.broadcast %cst_92 : f32 to vector<8x64xf32>
    %175 = arith.mulf %174, %173 : vector<8x64xf32>
    %176 = arith.addf %171, %175 : vector<8x64xf32>
    %cst_93 = arith.constant 0.797884583 : f32
    %177 = vector.broadcast %cst_93 : f32 to vector<8x64xf32>
    %178 = arith.mulf %177, %176 : vector<8x64xf32>
    %179 = math.tanh %178 : vector<8x64xf32>
    %cst_94 = arith.constant 1.000000e+00 : f32
    %180 = vector.broadcast %cst_94 : f32 to vector<8x64xf32>
    %181 = arith.addf %180, %179 : vector<8x64xf32>
    %cst_95 = arith.constant 5.000000e-01 : f32
    %182 = vector.broadcast %cst_95 : f32 to vector<8x64xf32>
    %183 = arith.mulf %182, %181 : vector<8x64xf32>
    %184 = arith.mulf %171, %183 : vector<8x64xf32>
    %c0_96 = arith.constant 0 : index
    %c0_97 = arith.constant 0 : index
    %c0_98 = arith.constant 0 : index
    %185 = vector.load %arg22[%c0_96, %c0_97, %c0_98] : memref<2x64x32xf32, #tpu.memory_space<vmem>>, vector<1x64x32xf32>
    %186 = vector.shape_cast %185 : vector<1x64x32xf32> to vector<64x32xf32>
    %cst_99 = arith.constant dense<0.000000e+00> : vector<8x32xf32>
    %187 = tpu.matmul %184, %186, %cst_99 {dimension_numbers = #tpu.dot_dimension_numbers<[1], [0], [0], [1], [0, 0, 1, 1], [], []>} : vector<8x64xf32>, vector<64x32xf32>, vector<8x32xf32> -> vector<8x32xf32>
    %188 = arith.addf %138, %187 : vector<8x32xf32>
    %c0_100 = arith.constant 0 : index
    %c0_101 = arith.constant 0 : index
    %c0_102 = arith.constant 0 : index
    %189 = vector.load %arg23[%c0_100, %c0_101, %c0_102] : memref<2x1x32xf32, #tpu.memory_space<vmem>>, vector<1x1x32xf32>
    %190 = vector.shape_cast %189 : vector<1x1x32xf32> to vector<1x32xf32>
    %191 = vector.broadcast %190 : vector<1x32xf32> to vector<8x32xf32>
    %192 = arith.addf %188, %191 : vector<8x32xf32>
    %cst_103 = arith.constant dense<0.000000e+00> : vector<8xf32>
    %193 = vector.multi_reduction <add>, %192, %cst_103 [1] : vector<8x32xf32> to vector<8xf32>
    %194 = vector.shape_cast %193 : vector<8xf32> to vector<8x1xf32>
    %cst_104 = arith.constant 3.200000e+01 : f32
    %195 = vector.broadcast %cst_104 : f32 to vector<8x1xf32>
    %196 = arith.divf %194, %195 : vector<8x1xf32>
    %197 = vector.broadcast %196 : vector<8x1xf32> to vector<8x32xf32>
    %198 = arith.subf %192, %197 : vector<8x32xf32>
    %199 = arith.mulf %198, %198 : vector<8x32xf32>
    %cst_105 = arith.constant dense<0.000000e+00> : vector<8xf32>
    %200 = vector.multi_reduction <add>, %199, %cst_105 [1] : vector<8x32xf32> to vector<8xf32>
    %201 = vector.shape_cast %200 : vector<8xf32> to vector<8x1xf32>
    %cst_106 = arith.constant 3.200000e+01 : f32
    %202 = vector.broadcast %cst_106 : f32 to vector<8x1xf32>
    %203 = arith.divf %201, %202 : vector<8x1xf32>
    %204 = vector.broadcast %196 : vector<8x1xf32> to vector<8x32xf32>
    %205 = arith.subf %192, %204 : vector<8x32xf32>
    %cst_107 = arith.constant 9.99999974E-6 : f32
    %206 = vector.broadcast %cst_107 : f32 to vector<8x1xf32>
    %207 = arith.addf %203, %206 : vector<8x1xf32>
    %208 = math.rsqrt %207 : vector<8x1xf32>
    %209 = vector.broadcast %208 : vector<8x1xf32> to vector<8x32xf32>
    %210 = arith.mulf %205, %209 : vector<8x32xf32>
    %c1 = arith.constant 1 : index
    %c0_108 = arith.constant 0 : index
    %c0_109 = arith.constant 0 : index
    %211 = vector.load %arg24[%c1, %c0_108, %c0_109] : memref<2x1x32xf32, #tpu.memory_space<vmem>>, vector<1x1x32xf32>
    %212 = vector.shape_cast %211 : vector<1x1x32xf32> to vector<1x32xf32>
    %213 = vector.broadcast %212 : vector<1x32xf32> to vector<8x32xf32>
    %214 = arith.mulf %210, %213 : vector<8x32xf32>
    %c1_110 = arith.constant 1 : index
    %c0_111 = arith.constant 0 : index
    %c0_112 = arith.constant 0 : index
    %215 = vector.load %arg25[%c1_110, %c0_111, %c0_112] : memref<2x1x32xf32, #tpu.memory_space<vmem>>, vector<1x1x32xf32>
    %216 = vector.shape_cast %215 : vector<1x1x32xf32> to vector<1x32xf32>
    %217 = vector.broadcast %216 : vector<1x32xf32> to vector<8x32xf32>
    %218 = arith.addf %214, %217 : vector<8x32xf32>
    %c1_113 = arith.constant 1 : index
    %c0_114 = arith.constant 0 : index
    %c0_115 = arith.constant 0 : index
    %219 = vector.load %arg16[%c1_113, %c0_114, %c0_115] : memref<2x32x96xf32, #tpu.memory_space<vmem>>, vector<1x32x96xf32>
    %220 = vector.shape_cast %219 : vector<1x32x96xf32> to vector<32x96xf32>
    %cst_116 = arith.constant dense<0.000000e+00> : vector<8x96xf32>
    %221 = tpu.matmul %218, %220, %cst_116 {dimension_numbers = #tpu.dot_dimension_numbers<[1], [0], [0], [1], [0, 0, 1, 1], [], []>} : vector<8x32xf32>, vector<32x96xf32>, vector<8x96xf32> -> vector<8x96xf32>
    %c1_117 = arith.constant 1 : index
    %c0_118 = arith.constant 0 : index
    %c0_119 = arith.constant 0 : index
    %222 = vector.load %arg17[%c1_117, %c0_118, %c0_119] : memref<2x1x96xf32, #tpu.memory_space<vmem>>, vector<1x1x96xf32>
    %223 = vector.shape_cast %222 : vector<1x1x96xf32> to vector<1x96xf32>
    %224 = vector.broadcast %223 : vector<1x96xf32> to vector<8x96xf32>
    %225 = arith.addf %221, %224 : vector<8x96xf32>
    %cst_120 = arith.constant dense<0.000000e+00> : vector<32x96xf32>
    %226 = tpu.matmul %71, %225, %cst_120 {dimension_numbers = #tpu.dot_dimension_numbers<[1], [0], [0], [1], [0, 0, 1, 1], [], []>} : vector<32x8xf32>, vector<8x96xf32>, vector<32x96xf32> -> vector<32x96xf32>
    %227 = vector.extract_strided_slice %226 {offsets = [0, 0], sizes = [32, 32], strides = [1, 1]} : vector<32x96xf32> to vector<32x32xf32>
    %228 = arith.mulf %227, %73 : vector<32x32xf32>
    %229 = vector.extract_strided_slice %226 {offsets = [0, 32], sizes = [32, 32], strides = [1, 1]} : vector<32x96xf32> to vector<32x32xf32>
    %230 = vector.extract_strided_slice %225 {offsets = [0, 64], sizes = [8, 32], strides = [1, 1]} : vector<8x96xf32> to vector<8x32xf32>
    %cst_121 = arith.constant dense<0.000000e+00> : vector<32x32xf32>
    %231 = tpu.matmul %228, %229, %cst_121 {dimension_numbers = #tpu.dot_dimension_numbers<[1], [1], [0], [0], [0, 0, 1, 0], [], []>} : vector<32x32xf32>, vector<32x32xf32>, vector<32x32xf32> -> vector<32x32xf32>
    %cst_122 = arith.constant 0.353553385 : f32
    %232 = vector.broadcast %cst_122 : f32 to vector<32x32xf32>
    %233 = arith.mulf %231, %232 : vector<32x32xf32>
    %234 = arith.addf %233, %74 : vector<32x32xf32>
    %cst_123 = arith.constant dense<0xFF800000> : vector<32xf32>
    %235 = vector.multi_reduction <maximumf>, %234, %cst_123 [1] : vector<32x32xf32> to vector<32xf32>
    %236 = vector.shape_cast %235 : vector<32xf32> to vector<32x1xf32>
    %237 = vector.broadcast %236 : vector<32x1xf32> to vector<32x32xf32>
    %238 = arith.subf %234, %237 : vector<32x32xf32>
    %239 = math.exp %238 : vector<32x32xf32>
    %cst_124 = arith.constant dense<0.000000e+00> : vector<32xf32>
    %240 = vector.multi_reduction <add>, %239, %cst_124 [1] : vector<32x32xf32> to vector<32xf32>
    %241 = vector.shape_cast %240 : vector<32xf32> to vector<32x1xf32>
    %242 = tpu.reciprocal %241 : vector<32x1xf32> -> vector<32x1xf32>
    %243 = vector.broadcast %242 : vector<32x1xf32> to vector<32x32xf32>
    %244 = arith.mulf %239, %243 : vector<32x32xf32>
    %cst_125 = arith.constant dense<0.000000e+00> : vector<32x8xf32>
    %245 = tpu.matmul %244, %71, %cst_125 {dimension_numbers = #tpu.dot_dimension_numbers<[1], [0], [0], [1], [0, 0, 1, 1], [], []>} : vector<32x32xf32>, vector<32x8xf32>, vector<32x8xf32> -> vector<32x8xf32>
    %cst_126 = arith.constant dense<0.000000e+00> : vector<32x32xf32>
    %246 = tpu.matmul %245, %230, %cst_126 {dimension_numbers = #tpu.dot_dimension_numbers<[1], [0], [0], [1], [0, 0, 1, 1], [], []>} : vector<32x8xf32>, vector<8x32xf32>, vector<32x32xf32> -> vector<32x32xf32>
    %247 = arith.mulf %246, %73 : vector<32x32xf32>
    %cst_127 = arith.constant dense<0.000000e+00> : vector<8x32xf32>
    %248 = tpu.matmul %72, %247, %cst_127 {dimension_numbers = #tpu.dot_dimension_numbers<[1], [0], [0], [1], [0, 0, 1, 1], [], []>} : vector<8x32xf32>, vector<32x32xf32>, vector<8x32xf32> -> vector<8x32xf32>
    %c1_128 = arith.constant 1 : index
    %c0_129 = arith.constant 0 : index
    %c0_130 = arith.constant 0 : index
    %249 = vector.load %arg18[%c1_128, %c0_129, %c0_130] : memref<2x32x32xf32, #tpu.memory_space<vmem>>, vector<1x32x32xf32>
    %250 = vector.shape_cast %249 : vector<1x32x32xf32> to vector<32x32xf32>
    %cst_131 = arith.constant dense<0.000000e+00> : vector<8x32xf32>
    %251 = tpu.matmul %248, %250, %cst_131 {dimension_numbers = #tpu.dot_dimension_numbers<[1], [0], [0], [1], [0, 0, 1, 1], [], []>} : vector<8x32xf32>, vector<32x32xf32>, vector<8x32xf32> -> vector<8x32xf32>
    %252 = arith.addf %192, %251 : vector<8x32xf32>
    %c1_132 = arith.constant 1 : index
    %c0_133 = arith.constant 0 : index
    %c0_134 = arith.constant 0 : index
    %253 = vector.load %arg19[%c1_132, %c0_133, %c0_134] : memref<2x1x32xf32, #tpu.memory_space<vmem>>, vector<1x1x32xf32>
    %254 = vector.shape_cast %253 : vector<1x1x32xf32> to vector<1x32xf32>
    %255 = vector.broadcast %254 : vector<1x32xf32> to vector<8x32xf32>
    %256 = arith.addf %252, %255 : vector<8x32xf32>
    %cst_135 = arith.constant dense<0.000000e+00> : vector<8xf32>
    %257 = vector.multi_reduction <add>, %256, %cst_135 [1] : vector<8x32xf32> to vector<8xf32>
    %258 = vector.shape_cast %257 : vector<8xf32> to vector<8x1xf32>
    %cst_136 = arith.constant 3.200000e+01 : f32
    %259 = vector.broadcast %cst_136 : f32 to vector<8x1xf32>
    %260 = arith.divf %258, %259 : vector<8x1xf32>
    %261 = vector.broadcast %260 : vector<8x1xf32> to vector<8x32xf32>
    %262 = arith.subf %256, %261 : vector<8x32xf32>
    %263 = arith.mulf %262, %262 : vector<8x32xf32>
    %cst_137 = arith.constant dense<0.000000e+00> : vector<8xf32>
    %264 = vector.multi_reduction <add>, %263, %cst_137 [1] : vector<8x32xf32> to vector<8xf32>
    %265 = vector.shape_cast %264 : vector<8xf32> to vector<8x1xf32>
    %cst_138 = arith.constant 3.200000e+01 : f32
    %266 = vector.broadcast %cst_138 : f32 to vector<8x1xf32>
    %267 = arith.divf %265, %266 : vector<8x1xf32>
    %268 = vector.broadcast %260 : vector<8x1xf32> to vector<8x32xf32>
    %269 = arith.subf %256, %268 : vector<8x32xf32>
    %cst_139 = arith.constant 9.99999974E-6 : f32
    %270 = vector.broadcast %cst_139 : f32 to vector<8x1xf32>
    %271 = arith.addf %267, %270 : vector<8x1xf32>
    %272 = math.rsqrt %271 : vector<8x1xf32>
    %273 = vector.broadcast %272 : vector<8x1xf32> to vector<8x32xf32>
    %274 = arith.mulf %269, %273 : vector<8x32xf32>
    %c1_140 = arith.constant 1 : index
    %c0_141 = arith.constant 0 : index
    %c0_142 = arith.constant 0 : index
    %275 = vector.load %arg26[%c1_140, %c0_141, %c0_142] : memref<2x1x32xf32, #tpu.memory_space<vmem>>, vector<1x1x32xf32>
    %276 = vector.shape_cast %275 : vector<1x1x32xf32> to vector<1x32xf32>
    %277 = vector.broadcast %276 : vector<1x32xf32> to vector<8x32xf32>
    %278 = arith.mulf %274, %277 : vector<8x32xf32>
    %c1_143 = arith.constant 1 : index
    %c0_144 = arith.constant 0 : index
    %c0_145 = arith.constant 0 : index
    %279 = vector.load %arg27[%c1_143, %c0_144, %c0_145] : memref<2x1x32xf32, #tpu.memory_space<vmem>>, vector<1x1x32xf32>
    %280 = vector.shape_cast %279 : vector<1x1x32xf32> to vector<1x32xf32>
    %281 = vector.broadcast %280 : vector<1x32xf32> to vector<8x32xf32>
    %282 = arith.addf %278, %281 : vector<8x32xf32>
    %c1_146 = arith.constant 1 : index
    %c0_147 = arith.constant 0 : index
    %c0_148 = arith.constant 0 : index
    %283 = vector.load %arg20[%c1_146, %c0_147, %c0_148] : memref<2x32x64xf32, #tpu.memory_space<vmem>>, vector<1x32x64xf32>
    %284 = vector.shape_cast %283 : vector<1x32x64xf32> to vector<32x64xf32>
    %cst_149 = arith.constant dense<0.000000e+00> : vector<8x64xf32>
    %285 = tpu.matmul %282, %284, %cst_149 {dimension_numbers = #tpu.dot_dimension_numbers<[1], [0], [0], [1], [0, 0, 1, 1], [], []>} : vector<8x32xf32>, vector<32x64xf32>, vector<8x64xf32> -> vector<8x64xf32>
    %c1_150 = arith.constant 1 : index
    %c0_151 = arith.constant 0 : index
    %c0_152 = arith.constant 0 : index
    %286 = vector.load %arg21[%c1_150, %c0_151, %c0_152] : memref<2x1x64xf32, #tpu.memory_space<vmem>>, vector<1x1x64xf32>
    %287 = vector.shape_cast %286 : vector<1x1x64xf32> to vector<1x64xf32>
    %288 = vector.broadcast %287 : vector<1x64xf32> to vector<8x64xf32>
    %289 = arith.addf %285, %288 : vector<8x64xf32>
    %290 = arith.mulf %289, %289 : vector<8x64xf32>
    %291 = arith.mulf %289, %290 : vector<8x64xf32>
    %cst_153 = arith.constant 4.471500e-02 : f32
    %292 = vector.broadcast %cst_153 : f32 to vector<8x64xf32>
    %293 = arith.mulf %292, %291 : vector<8x64xf32>
    %294 = arith.addf %289, %293 : vector<8x64xf32>
    %cst_154 = arith.constant 0.797884583 : f32
    %295 = vector.broadcast %cst_154 : f32 to vector<8x64xf32>
    %296 = arith.mulf %295, %294 : vector<8x64xf32>
    %297 = math.tanh %296 : vector<8x64xf32>
    %cst_155 = arith.constant 1.000000e+00 : f32
    %298 = vector.broadcast %cst_155 : f32 to vector<8x64xf32>
    %299 = arith.addf %298, %297 : vector<8x64xf32>
    %cst_156 = arith.constant 5.000000e-01 : f32
    %300 = vector.broadcast %cst_156 : f32 to vector<8x64xf32>
    %301 = arith.mulf %300, %299 : vector<8x64xf32>
    %302 = arith.mulf %289, %301 : vector<8x64xf32>
    %c1_157 = arith.constant 1 : index
    %c0_158 = arith.constant 0 : index
    %c0_159 = arith.constant 0 : index
    %303 = vector.load %arg22[%c1_157, %c0_158, %c0_159] : memref<2x64x32xf32, #tpu.memory_space<vmem>>, vector<1x64x32xf32>
    %304 = vector.shape_cast %303 : vector<1x64x32xf32> to vector<64x32xf32>
    %cst_160 = arith.constant dense<0.000000e+00> : vector<8x32xf32>
    %305 = tpu.matmul %302, %304, %cst_160 {dimension_numbers = #tpu.dot_dimension_numbers<[1], [0], [0], [1], [0, 0, 1, 1], [], []>} : vector<8x64xf32>, vector<64x32xf32>, vector<8x32xf32> -> vector<8x32xf32>
    %306 = arith.addf %256, %305 : vector<8x32xf32>
    %c1_161 = arith.constant 1 : index
    %c0_162 = arith.constant 0 : index
    %c0_163 = arith.constant 0 : index
    %307 = vector.load %arg23[%c1_161, %c0_162, %c0_163] : memref<2x1x32xf32, #tpu.memory_space<vmem>>, vector<1x1x32xf32>
    %308 = vector.shape_cast %307 : vector<1x1x32xf32> to vector<1x32xf32>
    %309 = vector.broadcast %308 : vector<1x32xf32> to vector<8x32xf32>
    %310 = arith.addf %306, %309 : vector<8x32xf32>
    %cst_164 = arith.constant dense<0.000000e+00> : vector<32xf32>
    %311 = vector.multi_reduction <add>, %310, %cst_164 [0] : vector<8x32xf32> to vector<32xf32>
    %312 = vector.shape_cast %311 : vector<32xf32> to vector<1x32xf32>
    %cst_165 = arith.constant 8.000000e+00 : f32
    %313 = vector.broadcast %cst_165 : f32 to vector<1x32xf32>
    %314 = arith.divf %312, %313 : vector<1x32xf32>
    %c0_166 = arith.constant 0 : index
    %c0_167 = arith.constant 0 : index
    %c0_168 = arith.constant 0 : index
    %315 = vector.load %arg28[%c0_166, %c0_167, %c0_168] : memref<1x1x32xf32, #tpu.memory_space<vmem>>, vector<1x1x32xf32>
    %316 = vector.shape_cast %315 : vector<1x1x32xf32> to vector<1x32xf32>
    %317 = vector.shape_cast %314 : vector<1x32xf32> to vector<1x1x32xf32>
    tpu.vector_store %arg28[%c0_166, %c0_167, %c0_168], %317 {strides = array<i32>} : memref<1x1x32xf32, #tpu.memory_space<vmem>>, vector<1x1x32xf32>,
    return
  }
  func.func @transform_0(%arg0: i32) -> (i32, i32, i32) {
    %c0_i32 = arith.constant 0 : i32
    %c0_i32_0 = arith.constant 0 : i32
    %c0_i32_1 = arith.constant 0 : i32
    return %arg0, %c0_i32, %c0_i32_0 : i32, i32, i32
  }
  func.func @transform_1(%arg0: i32) -> (i32, i32) {
    %c0_i32 = arith.constant 0 : i32
    %c0_i32_0 = arith.constant 0 : i32
    %c0_i32_1 = arith.constant 0 : i32
    return %c0_i32, %c0_i32_0 : i32, i32
  }
  func.func @transform_2(%arg0: i32) -> (i32, i32) {
    %c0_i32 = arith.constant 0 : i32
    %c0_i32_0 = arith.constant 0 : i32
    %c0_i32_1 = arith.constant 0 : i32
    return %c0_i32, %c0_i32_0 : i32, i32
  }
  func.func @transform_3(%arg0: i32) -> (i32, i32) {
    %c0_i32 = arith.constant 0 : i32
    %c0_i32_0 = arith.constant 0 : i32
    %c0_i32_1 = arith.constant 0 : i32
    return %c0_i32, %c0_i32_0 : i32, i32
  }
  func.func @transform_4(%arg0: i32) -> (i32, i32) {
    %c0_i32 = arith.constant 0 : i32
    %c0_i32_0 = arith.constant 0 : i32
    %c0_i32_1 = arith.constant 0 : i32
    return %c0_i32, %c0_i32_0 : i32, i32
  }
  func.func @transform_5(%arg0: i32) -> (i32, i32) {
    %c0_i32 = arith.constant 0 : i32
    %c0_i32_0 = arith.constant 0 : i32
    %c0_i32_1 = arith.constant 0 : i32
    return %c0_i32, %c0_i32_0 : i32, i32
  }
  func.func @transform_6(%arg0: i32) -> (i32, i32) {
    %c0_i32 = arith.constant 0 : i32
    %c0_i32_0 = arith.constant 0 : i32
    %c0_i32_1 = arith.constant 0 : i32
    return %c0_i32, %c0_i32_0 : i32, i32
  }
  func.func @transform_7(%arg0: i32) -> (i32, i32) {
    %c0_i32 = arith.constant 0 : i32
    %c0_i32_0 = arith.constant 0 : i32
    %c0_i32_1 = arith.constant 0 : i32
    return %c0_i32, %c0_i32_0 : i32, i32
  }
  func.func @transform_8(%arg0: i32) -> (i32, i32) {
    %c0_i32 = arith.constant 0 : i32
    %c0_i32_0 = arith.constant 0 : i32
    %c0_i32_1 = arith.constant 0 : i32
    return %c0_i32, %c0_i32_0 : i32, i32
  }
  func.func @transform_9(%arg0: i32) -> (i32, i32) {
    %c0_i32 = arith.constant 0 : i32
    %c0_i32_0 = arith.constant 0 : i32
    %c0_i32_1 = arith.constant 0 : i32
    return %c0_i32, %c0_i32_0 : i32, i32
  }
  func.func @transform_10(%arg0: i32) -> (i32, i32) {
    %c0_i32 = arith.constant 0 : i32
    %c0_i32_0 = arith.constant 0 : i32
    %c0_i32_1 = arith.constant 0 : i32
    return %c0_i32, %c0_i32_0 : i32, i32
  }
  func.func @transform_11(%arg0: i32) -> (i32, i32) {
    %c0_i32 = arith.constant 0 : i32
    %c0_i32_0 = arith.constant 0 : i32
    %c0_i32_1 = arith.constant 0 : i32
    return %c0_i32, %c0_i32_0 : i32, i32
  }
  func.func @transform_12(%arg0: i32) -> (i32, i32) {
    %c0_i32 = arith.constant 0 : i32
    %c0_i32_0 = arith.constant 0 : i32
    %c0_i32_1 = arith.constant 0 : i32
    return %c0_i32, %c0_i32_0 : i32, i32
  }
  func.func @transform_13(%arg0: i32) -> (i32, i32) {
    %c0_i32 = arith.constant 0 : i32
    %c0_i32_0 = arith.constant 0 : i32
    %c0_i32_1 = arith.constant 0 : i32
    return %c0_i32, %c0_i32_0 : i32, i32
  }
  func.func @transform_14(%arg0: i32) -> (i32, i32) {
    %c0_i32 = arith.constant 0 : i32
    %c0_i32_0 = arith.constant 0 : i32
    %c0_i32_1 = arith.constant 0 : i32
    return %c0_i32, %c0_i32_0 : i32, i32
  }
  func.func @transform_15(%arg0: i32) -> (i32, i32, i32) {
    %c0_i32 = arith.constant 0 : i32
    %c0_i32_0 = arith.constant 0 : i32
    %c0_i32_1 = arith.constant 0 : i32
    %c0_i32_2 = arith.constant 0 : i32
    return %c0_i32, %c0_i32_0, %c0_i32_1 : i32, i32, i32
  }
  func.func @transform_16(%arg0: i32) -> (i32, i32, i32) {
    %c0_i32 = arith.constant 0 : i32
    %c0_i32_0 = arith.constant 0 : i32
    %c0_i32_1 = arith.constant 0 : i32
    %c0_i32_2 = arith.constant 0 : i32
    return %c0_i32, %c0_i32_0, %c0_i32_1 : i32, i32, i32
  }
  func.func @transform_17(%arg0: i32) -> (i32, i32, i32) {
    %c0_i32 = arith.constant 0 : i32
    %c0_i32_0 = arith.constant 0 : i32
    %c0_i32_1 = arith.constant 0 : i32
    %c0_i32_2 = arith.constant 0 : i32
    return %c0_i32, %c0_i32_0, %c0_i32_1 : i32, i32, i32
  }
  func.func @transform_18(%arg0: i32) -> (i32, i32, i32) {
    %c0_i32 = arith.constant 0 : i32
    %c0_i32_0 = arith.constant 0 : i32
    %c0_i32_1 = arith.constant 0 : i32
    %c0_i32_2 = arith.constant 0 : i32
    return %c0_i32, %c0_i32_0, %c0_i32_1 : i32, i32, i32
  }
  func.func @transform_19(%arg0: i32) -> (i32, i32, i32) {
    %c0_i32 = arith.constant 0 : i32
    %c0_i32_0 = arith.constant 0 : i32
    %c0_i32_1 = arith.constant 0 : i32
    %c0_i32_2 = arith.constant 0 : i32
    return %c0_i32, %c0_i32_0, %c0_i32_1 : i32, i32, i32
  }
  func.func @transform_20(%arg0: i32) -> (i32, i32, i32) {
    %c0_i32 = arith.constant 0 : i32
    %c0_i32_0 = arith.constant 0 : i32
    %c0_i32_1 = arith.constant 0 : i32
    %c0_i32_2 = arith.constant 0 : i32
    return %c0_i32, %c0_i32_0, %c0_i32_1 : i32, i32, i32
  }
  func.func @transform_21(%arg0: i32) -> (i32, i32, i32) {
    %c0_i32 = arith.constant 0 : i32
    %c0_i32_0 = arith.constant 0 : i32
    %c0_i32_1 = arith.constant 0 : i32
    %c0_i32_2 = arith.constant 0 : i32
    return %c0_i32, %c0_i32_0, %c0_i32_1 : i32, i32, i32
  }
  func.func @transform_22(%arg0: i32) -> (i32, i32, i32) {
    %c0_i32 = arith.constant 0 : i32
    %c0_i32_0 = arith.constant 0 : i32
    %c0_i32_1 = arith.constant 0 : i32
    %c0_i32_2 = arith.constant 0 : i32
    return %c0_i32, %c0_i32_0, %c0_i32_1 : i32, i32, i32
  }
  func.func @transform_23(%arg0: i32) -> (i32, i32, i32) {
    %c0_i32 = arith.constant 0 : i32
    %c0_i32_0 = arith.constant 0 : i32
    %c0_i32_1 = arith.constant 0 : i32
    %c0_i32_2 = arith.constant 0 : i32
    return %c0_i32, %c0_i32_0, %c0_i32_1 : i32, i32, i32
  }
  func.func @transform_24(%arg0: i32) -> (i32, i32, i32) {
    %c0_i32 = arith.constant 0 : i32
    %c0_i32_0 = arith.constant 0 : i32
    %c0_i32_1 = arith.constant 0 : i32
    %c0_i32_2 = arith.constant 0 : i32
    return %c0_i32, %c0_i32_0, %c0_i32_1 : i32, i32, i32
  }
  func.func @transform_25(%arg0: i32) -> (i32, i32, i32) {
    %c0_i32 = arith.constant 0 : i32
    %c0_i32_0 = arith.constant 0 : i32
    %c0_i32_1 = arith.constant 0 : i32
    %c0_i32_2 = arith.constant 0 : i32
    return %c0_i32, %c0_i32_0, %c0_i32_1 : i32, i32, i32
  }
  func.func @transform_26(%arg0: i32) -> (i32, i32, i32) {
    %c0_i32 = arith.constant 0 : i32
    %c0_i32_0 = arith.constant 0 : i32
    %c0_i32_1 = arith.constant 0 : i32
    %c0_i32_2 = arith.constant 0 : i32
    return %c0_i32, %c0_i32_0, %c0_i32_1 : i32, i32, i32
  }
  func.func @transform_27(%arg0: i32) -> (i32, i32, i32) {
    %c0_i32 = arith.constant 0 : i32
    %c0_i32_0 = arith.constant 0 : i32
    %c0_i32_1 = arith.constant 0 : i32
    return %arg0, %c0_i32, %c0_i32_0 : i32, i32, i32
  }
}

</mosaic_0001>

<bundles_post_ra>
// kernel: beats_encoder.1
= control target key start
LH: loop header
LB: loop body
LE: loop exit
PB: predicated region body
PF: predicated region fallthrough
CT: control target
= control target key end

     0   :  { %s5403_s0 = inlined_call_operand.vmem [shape: f32[2,32,128], index: 0, kind: input, shape index: {}]   ;;  %s5404_s1 = inlined_call_operand.vmem [shape: f32[128,128], index: 1, kind: input, shape index: {}]   ;;  %s5405_s2 = inlined_call_operand.vmem [shape: f32[128,16], index: 2, kind: input, shape index: {}]   ;;  %s5406_s3 = inlined_call_operand.vmem [shape: f32[1,128], index: 3, kind: input, shape index: {}]   ;;  %s5407_s4 = inlined_call_operand.vmem [shape: f32[16,512], index: 4, kind: input, shape index: {}]   ;;  %s5408_s5 = inlined_call_operand.vmem [shape: f32[32,512], index: 5, kind: input, shape index: {}]   ;;  %s5409_s6 = inlined_call_operand.vmem [shape: f32[8,32], index: 6, kind: input, shape index: {}]   ;;  %s5410_s7 = inlined_call_operand.vmem [shape: f32[8,32], index: 7, kind: input, shape index: {}]   ;;  %s5411_s8 = inlined_call_operand.vmem [shape: f32[1,32], index: 8, kind: input, shape index: {}]   ;;  %s5412_s9 = inlined_call_operand.vmem [shape: f32[1,32], index: 9, kind: input, shape index: {}]   ;;  %s5413_s10 = inlined_call_operand.vmem [shape: f32[1,32], index: 10, kind: input, shape index: {}]   ;;  %s5414_s11 = inlined_call_operand.vmem [shape: f32[32,8], index: 11, kind: input, shape index: {}]   ;;  %s5415_s12 = inlined_call_operand.vmem [shape: f32[8,32], index: 12, kind: input, shape index: {}]   ;;  %s5416_s13 = inlined_call_operand.vmem [shape: f32[32,32], index: 13, kind: input, shape index: {}]   ;;  %s5417_s14 = inlined_call_operand.vmem [shape: f32[32,32], index: 14, kind: input, shape index: {}]   ;;  %s5418_s15 = inlined_call_operand.vmem [shape: f32[2,32,96], index: 15, kind: input, shape index: {}]   ;;  %s5419_s16 = inlined_call_operand.vmem [shape: f32[2,1,96], index: 16, kind: input, shape index: {}]   ;;  %s5420_s17 = inlined_call_operand.vmem [shape: f32[2,32,32], index: 17, kind: input, shape index: {}]   ;;  %s5421_s18 = inlined_call_operand.vmem [shape: f32[2,1,32], index: 18, kind: input, shape index: {}]   ;;  %s5422_s19 = inlined_call_operand.vmem [shape: f32[2,32,64], index: 19, kind: input, shape index: {}]   ;;  %s5423_s20 = inlined_call_operand.vmem [shape: f32[2,1,64], index: 20, kind: input, shape index: {}]   ;;  %s5424_s21 = inlined_call_operand.vmem [shape: f32[2,64,32], index: 21, kind: input, shape index: {}]   ;;  %s5425_s22 = inlined_call_operand.vmem [shape: f32[2,1,32], index: 22, kind: input, shape index: {}]   ;;  %s5426_s23 = inlined_call_operand.vmem [shape: f32[2,1,32], index: 23, kind: input, shape index: {}]   ;;  %s5427_s24 = inlined_call_operand.vmem [shape: f32[2,1,32], index: 24, kind: input, shape index: {}]   ;;  %s5428_s25 = inlined_call_operand.vmem [shape: f32[2,1,32], index: 25, kind: input, shape index: {}]   ;;  %s5429_s26 = inlined_call_operand.vmem [shape: f32[2,1,32], index: 26, kind: input, shape index: {}]   ;;  %s5430_s27 = inlined_call_operand.hbm [shape: f32[2,1,32], index: 27, kind: output, shape index: {}]  }
   0x1   :  { %5450 = sst [smem:[#allocation14_spill]] %s5403_s0 }
   0x2   :  { %5451 = sst [smem:[#allocation15_spill]] %s5404_s1 }
   0x3   :  { %5452 = sst [smem:[#allocation16_spill]] %s5405_s2 }
   0x4   :  { %5453 = sst [smem:[#allocation17_spill]] %s5406_s3 }
   0x5   :  { %5454 = sst [smem:[#allocation18_spill]] %s5407_s4 }
   0x6   :  { %5455 = sst [smem:[#allocation19_spill]] %s5408_s5 }
   0x7   :  { %5456 = sst [smem:[#allocation20_spill]] %s5409_s6 }
   0x8   :  { %5457 = sst [smem:[#allocation21_spill]] %s5410_s7 }
   0x9   :  { %5458 = sst [smem:[#allocation22_spill]] %s5411_s8 }
   0xa   :  { %5459 = sst [smem:[#allocation23_spill]] %s5412_s9 }
   0xb   :  { %5460 = sst [smem:[#allocation24_spill]] %s5413_s10 }
   0xc   :  { %5461 = sst [smem:[#allocation25_spill]] %s5414_s11 }
   0xd   :  { %5462 = sst [smem:[#allocation26_spill]] %s5430_s27 }
   0xe   :  { %32 = vsyncpa [#allocation3], 0 }
   0xf   :  { %34 = vsyncpa [#allocation3 + $0x1], 0  ;;  %s4601_s7 = smov 0   ;;  %s4603_s4 = smov 0  }
  0x10   :  { %s4605_s8 = smov 0   ;;  %s4607_s30 = smov 0  }
  0x11 LB: > { %5463 = sst [smem:[#allocation5_spill]] %s4440_s7  ;;  %s4622_s9 = sadd.s32 4294967295, %s4452_s30   ;;  %s4452_s30 = sphi %s4607_s30, %s5495_s30   ;;  %s4448_s8 = sphi %s4605_s8, %s5498_s8   ;;  %s4444_s4 = sphi %s4603_s4, %s5497_s4   ;;  %s4440_s7 = sphi %s4601_s7, %s5496_s7  }
  0x12   : > { %5464 = sst [smem:[#allocation6_spill]] %s4444_s4  ;;  %s3504_s5 = sadd.s32 4294967294, %s4452_s30  }
  0x13   : > { %5465 = sst [smem:[#allocation7_spill]] %s4448_s8  ;;  %s4626_s28 = sadd.s32 1, %s4452_s30  }
  0x14   : > { %5466 = sst [smem:[#allocation8_spill]] %s4452_s30  ;;  %s619_s0 = sadd.s32 1, %s4448_s8 }
  0x15   : > { %5467 = sst [smem:[#allocation9_spill]] %s4622_s9  ;;  %s616_s10 = ssub.s32 %s4452_s30, %s4626_s28 }
  0x16   : > { %5468 = sst [smem:[#allocation10_spill]] %s4626_s28  ;;  %p629_p0 = scmp.ne.s32.totalorder %s4448_s8, %s4444_s4 }
  0x17   : > { %p617_p1 = scmp.eq.s32.totalorder %s616_s10, 0  ;;  %p630_p2 = scmp.eq.s32.totalorder %s4622_s9, 1 }
  0x18   : > { %p635_p3 = scmp.ne.s32.totalorder %s4444_s4, %s4440_s7  ;;  %p636_p4 = scmp.eq.s32.totalorder %s3504_s5, 1 }
  0x19   : > { %s4637_s29 = scalar_select %p617_p1, %s4448_s8, %s619_s0  }
  0x1a   : > { %p4639_p5 = por %p630_p2, %p629_p0  ;;  %p4643_p6 = por %p636_p4, %p635_p3 }
  0x1b   : > { %5469 = sst [smem:[#allocation11_spill]] %s4637_s29  ;;  %p3507_p7 = scmp.ge.s32.totalorder %s4452_s30, 1 }
  0x1c   : > { %s5470_s1 = scalar_select %p4639_p5, 1, 0 }
  0x1d   : > { %s5472_s6 = scalar_select %p4643_p6, 1, 0 }
  0x1e   : > { %5471 = sst [smem:[#allocation12_spill]] %s5470_s1  ;;  %p740_p8 = scmp.lt.s32.totalorder %s4452_s30, 3 }
  0x1f   : > { %5473 = sst [smem:[#allocation13_spill]] %s5472_s6 }
  0x20   : > { %p741_p9 = pnand %p3507_p7, %p740_p8 }
  0x21   : > { %s5474_s3 = sld [smem:[#allocation15_spill]] (!%p741_p9)  ;;  %p811_p10 = scmp.lt.s32.totalorder (!%p741_p9), %s4622_s9, 1  ;;  %vm1061_vm0 = vcmask (!%p741_p9), 130048   ;;  %vm4457_vm1 = vmmov (!%p741_p9), 0   ;;  %vm1377_vm2 = vcmask (!%p741_p9), 261120   ;;  %vm1627_vm3 = vcmask (!%p741_p9), 64512  }
  0x22   : > { %744 = sbr.rel (%p741_p9) target bundleno = 7780 (0x1e64), region = 128  ;;  %s5475_s30 = sld [smem:[#allocation14_spill]] (!%p741_p9)  ;;  %vm4991_vm4 = vmpackc.low (!%p741_p9), %vm1377_vm2, %vm1377_vm2  ;;  %vm2389_vm5 = vcmask (!%p741_p9), 523264   ;;  %vm3434_vm6 = vcmask (!%p741_p9), 253952  }
  0x23   : > { %s5476_s1 = sld [smem:[#allocation17_spill]] (!%p741_p9)  ;;  %s5477_s11 = sld [smem:[#allocation16_spill]] (!%p741_p9) }
  0x24   : > { %s5478_s28 = sld [smem:[#allocation18_spill]] (!%p741_p9)  ;;  %s4455_s0 = smov (!%p741_p9), 64  }
  0x25   : > { %s5480_s2 = sld [smem:[#allocation20_spill]] (!%p741_p9)  ;;  %s4459_s27 = smov (!%p741_p9), 96  }
  0x26   : > { %s5482_s10 = sld [smem:[#allocation22_spill]] (!%p741_p9)  ;;  %s5485_s6 = sld [smem:[#allocation25_spill]] (!%p741_p9) }
  0x27   : > { %v831_v0 = vld [vmem:[%s5474_s3] sm:$0xff] (!%p741_p9)  ;;  %v832_v1 = vld [vmem:[%s5474_s3 + $0x8] sm:$0xff] (!%p741_p9)  ;;  %v833_v2 = vld [vmem:[%s5474_s3 + $0x10] sm:$0xff] (!%p741_p9)  ;;  %s5488_s4 = sld [smem:[#allocation6_spill]] (!%p741_p9) }
  0x28   : > { %v4081_v3 = vpack.c.bf16 (!%p741_p9), %v832_v1, %v831_v0  ;;  %v834_v4 = vld [vmem:[%s5474_s3 + $0x18] sm:$0xff] (!%p741_p9)  ;;  %v835_v6 = vld [vmem:[%s5474_s3 + $0x20] sm:$0xff] (!%p741_p9)  ;;  %v836_v7 = vld [vmem:[%s5474_s3 + $0x28] sm:$0xff] (!%p741_p9) }
  0x29   : > { %v4085_v5 = vpack.c.bf16 %v834_v4, %v833_v2  ;;  %s812_s5 = scalar_select %p811_p10, %s4622_s9, 1  ;;  %v4089_v8 = vpack.c.bf16 %v836_v7, %v835_v6  ;;  %v4677_v9 = vld [vmem:[%s5476_s1] ss:$0 sm:$0xff]  ;;  %v837_v11 = vld [vmem:[%s5474_s3 + $0x30] sm:$0xff]  ;;  %v838_v12 = vld [vmem:[%s5474_s3 + $0x38] sm:$0xff] }
  0x2a   : > { %4082 = vmatprep.subr.bf16.mxu0 %v4081_v3  ;;  %v936_v10 = vld [vmem:[%s5477_s11] sm:$0xff]  ;;  %v937_v15 = vld [vmem:[%s5477_s11 + $0x8] sm:$0xff]  ;;  %v938_v16 = vld [vmem:[%s5477_s11 + $0x10] sm:$0xff]  ;;  %v4093_v19 = vpack.c.bf16 %v838_v12, %v837_v11  ;;  %s5481_s9 = sld [smem:[#allocation21_spill]] }
  0x2b   : > { %4084 = vmatpush3.bf16.msra.mxu0 %v4081_v3  ;;  %s3624_s29 = sshll.u32 %s812_s5, 5  ;;  %v4113_v17 = vpack.c.bf16 %v937_v15, %v936_v10  ;;  %v939_v18 = vld [vmem:[%s5477_s11 + $0x18] sm:$0xff]  ;;  %v940_v21 = vld [vmem:[%s5477_s11 + $0x20] sm:$0xff]  ;;  %v941_v22 = vld [vmem:[%s5477_s11 + $0x28] sm:$0xff]  ;;  %s5479_s5 = sld [smem:[#allocation19_spill]] }
  0x2c   : > { %4086 = vmatprep.subr.bf16.mxu0 %v4085_v5  ;;  %s4672_s8 = scalar_lea.vmem %s5475_s30, %s3624_s29  ;;  %v4117_v20 = vpack.c.bf16 %v939_v18, %v938_v16  ;;  %v839_v23 = vld [vmem:[%s5474_s3 + $0x40] sm:$0xff]  ;;  %v840_v24 = vld [vmem:[%s5474_s3 + $0x48] sm:$0xff]  ;;  %v4121_v25 = vpack.c.bf16 %v941_v22, %v940_v21  ;;  %v942_v27 = vld [vmem:[%s5477_s11 + $0x30] sm:$0xff]  ;;  %s4458_s30 = smov 32  }
  0x2d   : > { %v816_v13 = vld [vmem:[%s4672_s8] sm:$0xff]  ;;  %4114 = vmatprep.subr.bf16.mxu1 %v4113_v17  ;;  %v4097_v26 = vpack.c.bf16 %v840_v24, %v839_v23  ;;  %v943_v28 = vld [vmem:[%s5477_s11 + $0x38] sm:$0xff]  ;;  %v841_v29 = vld [vmem:[%s5474_s3 + $0x50] sm:$0xff]  ;;  %s5484_s29 = sld [smem:[#allocation24_spill]] }
  0x2e   : > { %v827_v14 = vmul.f32 %v4677_v9, %v816_v13  ;;  %4116 = vmatpush3.bf16.msra.mxu1 %v4113_v17  ;;  %v842_v30 = vld [vmem:[%s5474_s3 + $0x58] sm:$0xff]  ;;  %v4125_v31 = vpack.c.bf16 %v943_v28, %v942_v27  ;;  %v944_v33 = vld [vmem:[%s5477_s11 + $0x40] sm:$0xff]  ;;  %v945_v34 = vld [vmem:[%s5477_s11 + $0x48] sm:$0xff]  ;;  %v4454_v13 = vmov 0.0  }
  0x2f   : > { %4088 = vmatpush3.bf16.msra.mxu0 %v4085_v5  ;;  %4118 = vmatprep.subr.bf16.mxu1 %v4117_v20  ;;  %v4101_v32 = vpack.c.bf16 %v842_v30, %v841_v29  ;;  %v843_v35 = vld [vmem:[%s5474_s3 + $0x60] sm:$0xff]  ;;  %v844_v36 = vld [vmem:[%s5474_s3 + $0x68] sm:$0xff]  ;;  %v4129_v37 = vpack.c.bf16 %v945_v34, %v944_v33  ;;  %v946_v39 = vld [vmem:[%s5477_s11 + $0x50] sm:$0xff] }
  0x30   : > { %4090 = vmatprep.subr.bf16.mxu0 %v4089_v8  ;;  %3812 = vmatprep.mubr.f32.mxu0 %v827_v14  ;;  %v4105_v38 = vpack.c.bf16 %v844_v36, %v843_v35  ;;  %v947_v40 = vld [vmem:[%s5477_s11 + $0x58] sm:$0xff]  ;;  %v845_v41 = vld [vmem:[%s5474_s3 + $0x70] sm:$0xff]  ;;  %v948_v45 = vld [vmem:[%s5477_s11 + $0x60] sm:$0xff] }
  0x31   : > { %v846_v42 = vld [vmem:[%s5474_s3 + $0x78] sm:$0xff]  ;;  %v4133_v43 = vpack.c.bf16 %v947_v40, %v946_v39  ;;  %v949_v46 = vld [vmem:[%s5477_s11 + $0x68] sm:$0xff]  ;;  %v818_v49 = vld [vmem:[%s4672_s8 + $0x10] sm:$0xff] }
  0x32   : > { %4120 = vmatpush3.bf16.msra.mxu1 %v4117_v20  ;;  %v4109_v44 = vpack.c.bf16 %v846_v42, %v845_v41  ;;  %v817_v47 = vld [vmem:[%s4672_s8 + $0x8] sm:$0xff]  ;;  %v4137_v48 = vpack.c.bf16 %v949_v46, %v948_v45  ;;  %v829_v51 = vmul.f32 %v4677_v9, %v818_v49  ;;  %v819_v52 = vld [vmem:[%s4672_s8 + $0x18] sm:$0xff]  ;;  %v950_v54 = vld [vmem:[%s5477_s11 + $0x70] sm:$0xff]  ;;  %s5489_s8 = sld [smem:[#allocation9_spill]] }
  0x33   : > { %4092 = vmatpush3.bf16.msra.mxu0 %v4089_v8  ;;  %4122 = vmatprep.subr.bf16.mxu1 %v4121_v25  ;;  %v828_v50 = vmul.f32 %v4677_v9, %v817_v47  ;;  %v830_v53 = vmul.f32 %v4677_v9, %v819_v52  ;;  %v951_v55 = vld [vmem:[%s5477_s11 + $0x78] sm:$0xff]  ;;  %v1054_v1 = vld [vmem:[%s5478_s28 + $0x8] sm:$0xff]  ;;  %v1053_v6 = vld [vmem:[%s5478_s28] sm:$0xff] }
  0x34   : > { %4094 = vmatprep.subr.bf16.mxu0 %v4093_v19  ;;  %v4141_v56 = vpack.c.bf16 %v951_v55, %v950_v54  ;;  %v1058_v2 = vld [vmem:[%s5478_s28 + $0x28] sm:$0xff]  ;;  %v1056_v3 = vld [vmem:[%s5478_s28 + $0x18] sm:$0xff]  ;;  %v1057_v7 = vld [vmem:[%s5478_s28 + $0x20] sm:$0xff] }
  0x35   : > { %v4145_v4 = vpack.c.bf16 %v1058_v2, %v1054_v1  ;;  %v1060_v5 = vld [vmem:[%s5478_s28 + $0x38] sm:$0xff]  ;;  %v4147_v9 = vpack.c.bf16 %v1057_v7, %v1053_v6  ;;  %v1055_v10 = vld [vmem:[%s5478_s28 + $0x10] sm:$0xff]  ;;  %v1253_v52 = vld [vmem:[%s5479_s5 + $0x8] sm:$0xff] }
  0x36   : > { %4124 = vmatpush3.bf16.msra.mxu1 %v4121_v25  ;;  %v4149_v8 = vpack.c.bf16 %v1060_v5, %v1056_v3  ;;  %v1059_v11 = vld [vmem:[%s5478_s28 + $0x30] sm:$0xff]  ;;  %v1264_v5 = vld [vmem:[%s5479_s5 + $0x60] sm:$0xff] }
  0x37   : > { %4096 = vmatpush3.bf16.msra.mxu0 %v4093_v19  ;;  %4126 = vmatprep.subr.bf16.mxu1 %v4125_v31  ;;  %v4151_v12 = vpack.c.bf16 %v1059_v11, %v1055_v10  ;;  %v1258_v45 = vld [vmem:[%s5479_s5 + $0x30] sm:$0xff] }
  0x38   : > { %4098 = vmatprep.subr.bf16.mxu0 %v4097_v26 }
  0x3a   : > { %4128 = vmatpush3.bf16.msra.mxu1 %v4125_v31 }
  0x3b   : > { %4100 = vmatpush3.bf16.msra.mxu0 %v4097_v26  ;;  %4130 = vmatprep.subr.bf16.mxu1 %v4129_v37 }
  0x3c   : > { %4102 = vmatprep.subr.bf16.mxu0 %v4101_v32 }
  0x3e   : > { %4132 = vmatpush3.bf16.msra.mxu1 %v4129_v37 }
  0x3f   : > { %4104 = vmatpush3.bf16.msra.mxu0 %v4101_v32  ;;  %4134 = vmatprep.subr.bf16.mxu1 %v4133_v43 }
  0x40   : > { %4106 = vmatprep.subr.bf16.mxu0 %v4105_v38 }
  0x42   : > { %4136 = vmatpush3.bf16.msra.mxu1 %v4133_v43 }
  0x43   : > { %4108 = vmatpush3.bf16.msra.mxu0 %v4105_v38  ;;  %4138 = vmatprep.subr.bf16.mxu1 %v4137_v48  ;;  %v1252_v38 = vld [vmem:[%s5479_s5] sm:$0xff] }
  0x44   : > { %4110 = vmatprep.subr.bf16.mxu0 %v4109_v44 }
  0x46   : > { %4140 = vmatpush3.bf16.msra.mxu1 %v4137_v48 }
  0x47   : > { %4112 = vmatpush3.bf16.msra.mxu0 %v4109_v44  ;;  %4142 = vmatprep.subr.bf16.mxu1 %v4141_v56  ;;  %v1254_v44 = vld [vmem:[%s5479_s5 + $0x10] sm:$0xff] }
  0x48   : > { %4146 = vmatprep.subr.bf16.mxu0 %v4145_v4  ;;  %v1262_v4 = vld [vmem:[%s5479_s5 + $0x50] sm:$0xff] }
  0x4a   : > { %3813 = vmatmul.mubr.f32.vlgmr.msra.gmra.mrb[0].mxu0 %v828_v50  ;;  %4144 = vmatpush3.bf16.msra.mxu1 %v4141_v56 }
  0x4b   : > { %3815 = vmatprep.mubr.f32.mxu0 %v829_v51  ;;  %4150 = vmatprep.subr.bf16.mxu1 %v4149_v8  ;;  %v1261_v8 = vld [vmem:[%s5479_s5 + $0x48] sm:$0xff] }
  0x4c   : > { %4148 = vmatpush1.bf16.msra.mxu0 %v4147_v9  ;;  %v1266_v9 = vld [vmem:[%s5479_s5 + $0x70] sm:$0xff] }
  0x4e   : > { %3816 = vmatmul.mubr.f32.gmra.mrb[2].mxu0 %v830_v53  ;;  %v1257_v53 = vld [vmem:[%s5479_s5 + $0x28] sm:$0xff] }
  0x4f   : > { %1138 = vmatprep.mubr.f32.mxu0 %v4454_v13 }
 0x11d   : > { %v3814_v57 = vpop.f32.mrb[0].mxu0 }
 0x11e   : > { %v913_v58 = vpop.f32.mrb[1].mxu0  ;;  %v933_v60 = vmul.f32 %v3814_v57, %v3814_v57 }
 0x11f   : > { %v932_v59 = vmul.f32 %v913_v58, %v913_v58 }
 0x121   : > { %3850 = vmatprep.mubr.f32.mxu1 %v932_v59  ;;  %v3817_v61 = vpop.f32.mrb[2].mxu0 }
 0x122   : > { %3851 = vmatmul.mubr.f32.vlgmr.msra.gmra.mrb[0].mxu1 %v933_v60  ;;  %v935_v62 = vmul.f32 %v3817_v61, %v3817_v61  ;;  %v923_v63 = vpop.f32.mrb[3].mxu0  ;;  %v1256_v60 = vld [vmem:[%s5479_s5 + $0x20] sm:$0xff] }
 0x123   : > { %v934_v0 = vmul.f32 %v923_v63, %v923_v63  ;;  %4152 = vmatpush1.bf16.msra.mxu1 %v4151_v12  ;;  %v1260_v61 = vld [vmem:[%s5479_s5 + $0x40] sm:$0xff]  ;;  %v4456_v12 = vmov 0.0|0.0  }
 0x124   : > { %4153 = vmatprep.subr.bf16.mxu0 %v4456_v12  ;;  %4159 = vmatprep.subr.bf16.mxu1 %v4456_v12 }
 0x125   : > { %3853 = vmatprep.mubr.f32.mxu1 %v934_v0 }
 0x126   : > { %3854 = vmatmul.mubr.f32.gmra.mrb[2].mxu1 %v935_v62 }
 0x127   : > { %1227 = vmatprep.mubr.f32.mxu1 %v4454_v13 }
 0x1f5   : > { %v3852_v14 = vpop.f32.mrb[0].mxu1 }
 0x1f6   : > { %v1024_v15 = vadd.f32 1e-06, %v3852_v14  ;;  %v1018_v16 = vpop.f32.mrb[1].mxu1  ;;  %v1255_v14 = vld [vmem:[%s5479_s5 + $0x18] sm:$0xff] }
 0x1f7   : > { %v1019_v17 = vadd.f32 1e-06, %v1018_v16 }
 0x1f8   : > { %4336 = vlog2.f32 %v1024_v15  ;;  %v1265_v15 = vld [vmem:[%s5479_s5 + $0x68] sm:$0xff] }
 0x1f9   : > { %4338 = vlog2.f32 %v1019_v17  ;;  %v3855_v18 = vpop.f32.mrb[2].mxu1 }
 0x1fa   : > { %v1028_v19 = vpop.f32.mrb[3].mxu1  ;;  %v1034_v20 = vadd.f32 1e-06, %v3855_v18  ;;  %v1259_v18 = vld [vmem:[%s5479_s5 + $0x38] sm:$0xff] }
 0x1fb   : > { %v1029_v21 = vadd.f32 1e-06, %v1028_v19  ;;  %v1263_v19 = vld [vmem:[%s5479_s5 + $0x58] sm:$0xff] }
 0x1fd   : > { %4340 = vlog2.f32 %v1029_v21 }
 0x1fe   : > { %4342 = vlog2.f32 %v1034_v20 }
 0x202   : > { %v4337_v22 = vpop.eup %4336 }
 0x203   : > { %v4339_v23 = vpop.eup %4338  ;;  %v1040_v24 = vmul.f32 0.6931472, %v4337_v22  ;;  %v1267_v22 = vld [vmem:[%s5479_s5 + $0x78] sm:$0xff] }
 0x204   : > { %v1038_v25 = vmul.f32 0.6931472, %v4339_v23 }
 0x205   : > { %v3512_v28 = vadd.f32 -15.41663, %v1040_v24 }
 0x206   : > { %v3511_v26 = vadd.f32 -15.41663, %v1038_v25 }
 0x207   : > { %v4341_v27 = vpop.eup %4340  ;;  %v1050_v33 = vmul.f32 0.07626811, %v3512_v28 }
 0x208   : > { %v1049_v29 = vmul.f32 0.07626811, %v3511_v26  ;;  %v1042_v30 = vmul.f32 0.6931472, %v4341_v27  ;;  %v4343_v31 = vpop.eup %4342 }
 0x209   : > { %v1044_v34 = vmul.f32 0.6931472, %v4343_v31 }
 0x20a   : > { %v3513_v32 = vadd.f32 -15.41663, %v1042_v30  ;;  %3515 = vmatmul.mubr.msk.f32.vlgmr.msra.gmra.mrb[4].mxu0 %vm1061_vm0, %v1049_v29  ;;  %3519 = vmatmul.mubr.msk.f32.vlgmr.msra.gmra.mrb[4].mxu1 %vm1061_vm0, %v1049_v29 }
 0x20b   : > { %1144 = vmatprep.mubr.f32.mxu0 %v4454_v13  ;;  %1233 = vmatprep.mubr.f32.mxu1 %v4454_v13  ;;  %v3514_v36 = vadd.f32 -15.41663, %v1044_v34 }
 0x20c   : > { %v1051_v35 = vmul.f32 0.07626811, %v3513_v32 }
 0x20d   : > { %v1052_v37 = vmul.f32 0.07626811, %v3514_v36 }
 0x20e   : > { %3516 = vmatmul.mubr.msk.f32.gmra.mrb[6].mxu0 %vm1061_vm0, %v1050_v33  ;;  %3520 = vmatmul.mubr.msk.f32.gmra.mrb[6].mxu1 %vm1061_vm0, %v1050_v33 }
 0x20f   : > { %1150 = vmatprep.mubr.f32.mxu0 %v4454_v13  ;;  %1239 = vmatprep.mubr.f32.mxu1 %v4454_v13 }
 0x212   : > { %3517 = vmatmul.mubr.msk.f32.gmra.mrb[8].mxu0 %vm1061_vm0, %v1051_v35  ;;  %3521 = vmatmul.mubr.msk.f32.gmra.mrb[8].mxu1 %vm1061_vm0, %v1051_v35 }
 0x213   : > { %1156 = vmatprep.mubr.f32.mxu0 %v4454_v13  ;;  %1245 = vmatprep.mubr.f32.mxu1 %v4454_v13 }
 0x216   : > { %3518 = vmatmul.mubr.msk.f32.gmra.mrb[10].mxu0 %vm1061_vm0, %v1052_v37  ;;  %3522 = vmatmul.mubr.msk.f32.gmra.mrb[10].mxu1 %vm1061_vm0, %v1052_v37 }
 0x217   : > { %3864 = vmatprep.mubr.msk.f32.mxu0 %vm4457_vm1, %v4454_v13  ;;  %3875 = vmatprep.mubr.msk.f32.mxu1 %vm4457_vm1, %v4454_v13 }
 0x2dd   : > { %v1140_v39 = vpop.f32.mrb[4].mxu0  ;;  %v1229_v40 = vpop.f32.mrb[4].mxu1 }
 0x2de   : > { %v4808_v41 = vmul.f32 %v1252_v38, %v1140_v39  ;;  %v1142_v42 = vpop.f32.mrb[5].mxu0  ;;  %v1231_v43 = vpop.f32.mrb[5].mxu1  ;;  %v4818_v48 = vmul.f32 %v1254_v44, %v1229_v40 }
 0x2df   : > { %v1269_v56 = vmul.f32 %v1253_v52, %v1142_v42  ;;  %v1271_v16 = vmul.f32 %v1255_v14, %v1231_v43 }
 0x2e0   : > { %1288 = vrot.lane.b32.xlu0 %v4808_v41, %s4455_s0 }
 0x2e1   : > { %v1146_v46 = vpop.f32.mrb[6].mxu0  ;;  %v1235_v47 = vpop.f32.mrb[6].mxu1 }
 0x2e2   : > { %v4820_v49 = vmul.f32 %v1258_v45, %v1235_v47  ;;  %v1148_v50 = vpop.f32.mrb[7].mxu0  ;;  %v1237_v51 = vpop.f32.mrb[7].mxu1  ;;  %v1272_v0 = vmul.f32 %v1256_v60, %v1146_v46 }
 0x2e3   : > { %v1273_v57 = vmul.f32 %v1257_v53, %v1148_v50  ;;  %v1275_v20 = vmul.f32 %v1259_v18, %v1237_v51 }
 0x2e4   : > { %1336 = vrot.lane.b32.xlu0 %v4818_v48, %s4455_s0  ;;  %1338 = vrot.lane.b32.xlu1 %v4820_v49, %s4455_s0 }
 0x2e5   : > { %v1152_v54 = vpop.f32.mrb[8].mxu0  ;;  %v1241_v55 = vpop.f32.mrb[8].mxu1 }
 0x2e6   : > { %v1154_v58 = vpop.f32.mrb[9].mxu0  ;;  %v1243_v59 = vpop.f32.mrb[9].mxu1  ;;  %v1276_v1 = vmul.f32 %v1260_v61, %v1152_v54  ;;  %v1278_v6 = vmul.f32 %v1262_v4, %v1241_v55 }
 0x2e7   : > { %v1277_v10 = vmul.f32 %v1261_v8, %v1154_v58  ;;  %v1279_v21 = vmul.f32 %v1263_v19, %v1243_v59 }
 0x2e8   : > { %1312 = vrot.lane.b32.xlu0 %v1269_v56, %s4455_s0  ;;  %1314 = vrot.lane.b32.xlu1 %v1273_v57, %s4455_s0 }
 0x2e9   : > { %v1158_v62 = vpop.f32.mrb[10].mxu0  ;;  %v1247_v63 = vpop.f32.mrb[10].mxu1 }
 0x2ea   : > { %v1160_v2 = vpop.f32.mrb[11].mxu0  ;;  %v1249_v3 = vpop.f32.mrb[11].mxu1  ;;  %v1280_v7 = vmul.f32 %v1264_v5, %v1158_v62  ;;  %v1282_v11 = vmul.f32 %v1266_v9, %v1247_v63 }
 0x2eb   : > { %v1281_v17 = vmul.f32 %v1265_v15, %v1160_v2  ;;  %v1283_v23 = vmul.f32 %v1267_v22, %v1249_v3 }
 0x2ec   : > { %1290 = vrot.lane.b32.xlu0 %v1272_v0, %s4455_s0  ;;  %1292 = vrot.lane.b32.xlu1 %v1276_v1, %s4455_s0 }
 0x2f0   : > { %1340 = vrot.lane.b32.xlu0 %v1278_v6, %s4455_s0  ;;  %1294 = vrot.lane.b32.xlu1 %v1280_v7, %s4455_s0 }
 0x2f4   : > { %1316 = vrot.lane.b32.xlu0 %v1277_v10, %s4455_s0  ;;  %1342 = vrot.lane.b32.xlu1 %v1282_v11, %s4455_s0 }
 0x2f8   : > { %1360 = vrot.lane.b32.xlu0 %v1271_v16, %s4455_s0  ;;  %1318 = vrot.lane.b32.xlu1 %v1281_v17, %s4455_s0 }
 0x2fc   : > { %1364 = vrot.lane.b32.xlu0 %v1279_v21, %s4455_s0  ;;  %1362 = vrot.lane.b32.xlu1 %v1275_v20, %s4455_s0 }
 0x300   : > { %1366 = vrot.lane.b32.xlu1 %v1283_v23, %s4455_s0 }
 0x352   : > { %v1289_v24 = vpop.permute.xlu0 %1288 }
 0x353   : > { %v1300_v29 = vadd.f32 %v1289_v24, %v4808_v41 }
 0x355   : > { %v1304_v32 = vadd.f32 %v1300_v29, %v1269_v56 }
 0x356   : > { %v1337_v25 = vpop.permute.xlu0 %1336  ;;  %v1339_v26 = vpop.permute.xlu1 %1338 }
 0x35a   : > { %v1313_v27 = vpop.permute.xlu0 %1312  ;;  %v1315_v28 = vpop.permute.xlu1 %1314 }
 0x35b   : > { %v1324_v34 = vadd.f32 %v1313_v27, %v1304_v32 }
 0x35d   : > { %v1328_v40 = vadd.f32 %v1324_v34, %v4818_v48 }
 0x35e   : > { %v1291_v30 = vpop.permute.xlu0 %1290  ;;  %v1293_v31 = vpop.permute.xlu1 %1292 }
 0x35f   : > { %v1301_v33 = vadd.f32 %v1291_v30, %v1272_v0  ;;  %v1302_v36 = vadd.f32 %v1293_v31, %v1276_v1  ;;  %v1348_v50 = vadd.f32 %v1337_v25, %v1328_v40  ;;  %v3526_v31 = vld [vmem:[%s5484_s29] ss:$0 sm:$0xff] }
 0x360   : > { %v1543_v40 = vld [vmem:[%s5418_s15] sm:$0xff] }
 0x361   : > { %v1305_v35 = vadd.f32 %v1301_v33, %v1273_v57  ;;  %v1306_v43 = vadd.f32 %v1302_v36, %v1277_v10  ;;  %v1352_v57 = vadd.f32 %v1348_v50, %v1271_v16  ;;  %v3524_v16 = vld [vmem:[%s5482_s10] ss:$0 sm:$0xff]  ;;  %s5491_s10 = sld [smem:[#allocation26_spill]] }
 0x362   : > { %v1341_v37 = vpop.permute.xlu0 %1340  ;;  %v1295_v38 = vpop.permute.xlu1 %1294 }
 0x363   : > { %v1325_v39 = vadd.f32 %v1315_v28, %v1305_v35  ;;  %v1303_v42 = vadd.f32 %v1295_v38, %v1280_v7 }
 0x365   : > { %v1329_v44 = vadd.f32 %v1325_v39, %v4820_v49  ;;  %v1307_v51 = vadd.f32 %v1303_v42, %v1281_v17  ;;  %v1544_v42 = vld [vmem:[%s5418_s15 + $0x8] sm:$0xff] }
 0x366   : > { %v1317_v45 = vpop.permute.xlu0 %1316  ;;  %v1343_v46 = vpop.permute.xlu1 %1342 }
 0x367   : > { %v1326_v47 = vadd.f32 %v1317_v45, %v1306_v43  ;;  %v1349_v52 = vadd.f32 %v1339_v26, %v1329_v44  ;;  %v4160_v43 = vpack.c.bf16 %v1544_v42, %v1543_v40  ;;  %v1545_v44 = vld [vmem:[%s5418_s15 + $0x10] sm:$0xff]  ;;  %v1546_v45 = vld [vmem:[%s5418_s15 + $0x18] sm:$0xff] }
 0x368   : > { %v5048_v40 = vld [vmem:[%s5417_s14 + $0x10] sm:$0xff] }
 0x369   : > { %v1330_v41 = vadd.f32 %v1326_v47, %v1278_v6  ;;  %v1353_v59 = vadd.f32 %v1349_v52, %v1275_v20  ;;  %v1376_v6 = vld [vmem:[%s5480_s2] sm:$0xff]  ;;  %s5483_s2 = sld [smem:[#allocation23_spill]]  ;;  %4161 = vmatpush3.bf16.msra.mxu1 %v4160_v43 }
 0x36a   : > { %v1361_v53 = vpop.permute.xlu0 %1360  ;;  %v1319_v54 = vpop.permute.xlu1 %1318  ;;  %4162 = vmatprep.subr.bf16.mxu1 %v4456_v12  ;;  %v3527_v52 = vld [vmem:[%s5426_s23] ss:$0 sm:$0xff] }
 0x36b   : > { %v1327_v55 = vadd.f32 %v1319_v54, %v1307_v51  ;;  %v1350_v56 = vadd.f32 %v1341_v37, %v1330_v41  ;;  %v1372_v48 = vadd.f32 %v1361_v53, %v1352_v57  ;;  %v3528_v54 = vld [vmem:[%s5427_s24] ss:$0 sm:$0xff] }
 0x36c   : > { %v4936_v57 = vld [vmem:[%s5485_s6] sm:$0xff] }
 0x36d   : > { %v1331_v58 = vadd.f32 %v1327_v55, %v1282_v11  ;;  %v1354_v61 = vadd.f32 %v1350_v56, %v1279_v21  ;;  %v1451_v11 = vld [vmem:[%s5481_s9] sm:$0xff] }
 0x36e   : > { %v1363_v60 = vpop.permute.xlu1 %1362  ;;  %v1365_v49 = vpop.permute.xlu0 %1364 }
 0x36f   : > { %v1373_v62 = vadd.f32 %v1363_v60, %v1353_v59  ;;  %v1351_v63 = vadd.f32 %v1343_v46, %v1331_v58  ;;  %v1374_v3 = vadd.f32 %v1365_v49, %v1354_v61  ;;  %v3525_v29 = vld [vmem:[%s5483_s2] ss:$0 sm:$0xff]  ;;  %v4163_v46 = vpack.c.bf16 %v1546_v45, %v1545_v44  ;;  %v4946_v60 = vld [vmem:[%s5485_s6 + $0x8] sm:$0xff]  ;;  %v4962_v49 = vld [vmem:[%s5485_s6 + $0x18] sm:$0xff]  ;;  %s3621_s2 = sshll.u32 %s5489_s8, 4  ;;  %s4460_s8 = smov [#allocation2]  }
 0x370   : > { %v3529_v58 = vld [vmem:[%s5419_s16] ss:$0 sm:$0xff]  ;;  %s5361_s7 = scalar_lea.hbm %s5491_s10, %s3621_s2  ;;  %s4394_s5 = sshll.u32 %s4460_s8, 4  ;;  %s4395_s5 = int_to_ptr.vmem [resolvable:$false] %s4394_s5 }
 0x371   : > { %v4154_v0 = vpack.c.bf16 %v1373_v62, %v1372_v48  ;;  %v1355_v1 = vadd.f32 %v1351_v63, %v1283_v23  ;;  %4164 = vmatpush3.bf16.msra.mxu1 %v4163_v46  ;;  %v4952_v62 = vpack.c.bf16 %v4946_v60, %v4936_v57  ;;  %v4957_v63 = vld [vmem:[%s5485_s6 + $0x10] sm:$0xff]  ;;  %s4396_s6 = scalar_lea.vmem %s4395_s5, 32 }
 0x372   : > { %v1367_v2 = vpop.permute.xlu1 %1366 }
 0x373   : > { %v1375_v4 = vadd.f32 %v1367_v2, %v1355_v1  ;;  %4155 = vmatpush3.bf16.msra.mxu0 %v4154_v0  ;;  %v4967_v0 = vpack.c.bf16 %v4962_v49, %v4957_v63  ;;  %v4983_v1 = vld [vmem:[%s5416_s13] sm:$0xff] }
 0x374   : > { %4156 = vmatprep.subr.bf16.mxu0 %v4456_v12 }
 0x375   : > { %v4157_v5 = vpack.c.bf16 %v1375_v4, %v1374_v3 }
 0x377   : > { %4158 = vmatpush3.bf16.msra.mxu0 %v4157_v5 }
 0x37a   : > { %3865 = vmatmul.mubr.msk.f32.vlgmr.msra.gmra.mrb[12].mxu0 %vm1377_vm2, %v1376_v6 }
 0x37b   : > { %3880 = vmatprep.mubr.msk.f32.mxu0 %vm1627_vm3, %v4936_v57 }
 0x44d   : > { %v1447_v7 = vpop.f32.mrb[12].mxu0 }
 0x44e   : > { %1453 = vrot.lane.b32.xlu0 %v1447_v7, %s4458_s30  ;;  %v3866_v8 = vpop.f32.mrb[13].mxu0 }
 0x4c0   : > { %v1454_v9 = vpop.permute.xlu0 %1453 }
 0x4c1   : > { %v1456_v10 = vsub.f32 %v1447_v7, %v1454_v9 }
 0x4c3   : > { %1458 = vrot.lane.b32.xlu1 %v1456_v10, %s4459_s27 }
 0x535   : > { %v1459_v14 = vpop.permute.xlu1 %1458 }
 0x536   : > { %v1461_v15 = vmul.f32 %v1459_v14, %v1451_v11 }
 0x538   : > { %v1462_v17 = vadd.f32 %v1461_v15, %v1447_v7 }
 0x53a   : > { %v1470_v18 = vadd.f32 %v3524_v16, %v1462_v17 }
 0x53c   : > { %v1471_v19 = vsel %vm1377_vm2, %v1470_v18, 0.0 }
 0x53d   : > { %1472 = vadd.xlane.f32.xlu0 %v1471_v19 }
 0x5ca   : > { %v1473_v20 = vpop.xlane.xlu0 %1472 }
 0x5cb   : > { %v1475_v21 = vmul.f32 0.03125, %v1473_v20  ;;  %v5007_v20 = vld [vmem:[%s5416_s13 + $0x8] sm:$0xff] }
 0x5cd   : > { %v1476_v22 = vsub.f32 %v1470_v18, %v1475_v21  ;;  %v5012_v21 = vld [vmem:[%s5416_s13 + $0x10] sm:$0xff] }
 0x5cf   : > { %v1477_v23 = vmul.f32 %v1476_v22, %v1476_v22 }
 0x5d1   : > { %v1478_v24 = vsel %vm1377_vm2, %v1477_v23, 0.0  ;;  %v5018_v23 = vld [vmem:[%s5416_s13 + $0x18] sm:$0xff] }
 0x5d2   : > { %1479 = vadd.xlane.f32.xlu1 %v1478_v24 }
 0x65f   : > { %v1480_v25 = vpop.xlane.xlu1 %1479 }
 0x660   : > { %v1481_v26 = vmul.f32 0.03125, %v1480_v25 }
 0x662   : > { %v1482_v27 = vadd.f32 1e-05, %v1481_v26 }
 0x664   : > { %4344 = vrsqrt.f32 %v1482_v27  ;;  %v5030_v27 = vld [vmem:[%s5417_s14 + $0x8] sm:$0xff] }
 0x66e   : > { %v4345_v28 = vpop.eup %4344 }
 0x66f   : > { %v1484_v30 = vmul.f32 %v4345_v28, %v1476_v22 }
 0x671   : > { %v1492_v32 = vmul.f32 %v3525_v29, %v1484_v30  ;;  %v5035_v30 = vld [vmem:[%s5417_s14] sm:$0xff] }
 0x673   : > { %v4907_v33 = vadd.f32 %v3526_v31, %v1492_v32 }
 0x675   : > { %v1514_v34 = vsel %vm1377_vm2, %v4907_v33, 0.0 }
 0x676   : > { %1515 = vadd.xlane.f32.xlu0 %v1514_v34 }
 0x703   : > { %v1516_v35 = vpop.xlane.xlu0 %1515 }
 0x704   : > { %v1517_v36 = vmul.f32 0.03125, %v1516_v35 }
 0x706   : > { %v1518_v37 = vsub.f32 %v4907_v33, %v1517_v36  ;;  %v5042_v36 = vld [vmem:[%s5417_s14 + $0x18] sm:$0xff] }
 0x708   : > { %v1519_v38 = vmul.f32 %v1518_v37, %v1518_v37 }
 0x70a   : > { %v1520_v39 = vsel %vm1377_vm2, %v1519_v38, 0.0 }
 0x70b   : > { %1521 = vadd.xlane.f32.xlu0 %v1520_v39 }
 0x798   : > { %v1522_v47 = vpop.xlane.xlu0 %1521 }
 0x799   : > { %v1523_v41 = vmul.f32 0.03125, %v1522_v47 }
 0x79b   : > { %v1524_v50 = vadd.f32 1e-05, %v1523_v41 }
 0x79d   : > { %4346 = vrsqrt.f32 %v1524_v50 }
 0x7a7   : > { %v4347_v51 = vpop.eup %4346 }
 0x7a8   : > { %v1526_v53 = vmul.f32 %v4347_v51, %v1518_v37 }
 0x7aa   : > { %v1534_v55 = vmul.f32 %v3527_v52, %v1526_v53 }
 0x7ac   : > { %v1542_v56 = vadd.f32 %v3528_v54, %v1534_v55 }
 0x7ae   : > { %3876 = vmatmul.mubr.msk.f32.vlgmr.msra.gmra.mrb[12].mxu1 %vm1377_vm2, %v1542_v56 }
 0x881   : > { %v1623_v59 = vpop.f32.mrb[12].mxu1 }
 0x882   : > { %v4948_v48 = vadd.f32 %v3529_v58, %v1623_v59  ;;  %v3877_v61 = vpop.f32.mrb[13].mxu1 }
 0x884   : > { %3878 = vmatprep.subr.mxu0 %v4948_v48 }
 0x885   : > { %3879 = vmatpush3.msra.mxu0 %v4948_v48 }
 0x886   : > { %3881 = vmatmul.mubr.msk.f32.vlgmr.msra.gmra.mrb[14].mxu0 %vm1627_vm3, %v4946_v60  ;;  %4178 = vmatprep.subr.bf16.mxu0 %v4952_v62 }
 0x887   : > { %3883 = vmatprep.mubr.msk.f32.mxu0 %vm1627_vm3, %v4957_v63  ;;  %4180 = vmatpush3.bf16.msra.mxu0 %v4952_v62 }
 0x888   : > { %4182 = vmatprep.subr.bf16.mxu0 %v4967_v0 }
 0x88a   : > { %3884 = vmatmul.mubr.msk.f32.gmra.mrb[16].mxu0 %vm1627_vm3, %v4962_v49 }
 0x88b   : > { %4184 = vmatpush3.bf16.msra.mxu0 %v4967_v0 }
 0x959   : > { %v3882_v2 = vpop.f32.mrb[14].mxu0 }
 0x95a   : > { %v1706_v3 = vpop.f32.mrb[15].mxu0  ;;  %v1726_v22 = vmul.f32 %v3882_v2, %v5007_v20 }
 0x95b   : > { %v4316_v4 = vpack.i.bf16 %v3882_v2, %v1706_v3  ;;  %v1725_v5 = vmul.f32 %v1706_v3, %v4983_v1 }
 0x95d   : > { %4317 = vrot.lane.b32.xlu1 %v4316_v4, %s4459_s27  ;;  %v3885_v6 = vpop.f32.mrb[16].mxu0  ;;  %3894 = vmatprep.mubr.msk.f32.mxu1 %vm1377_vm2, %v1725_v5 }
 0x95e   : > { %v1716_v7 = vpop.f32.mrb[17].mxu0  ;;  %v1728_v25 = vmul.f32 %v3885_v6, %v5018_v23 }
 0x95f   : > { %v4321_v8 = vpack.i.bf16 %v3885_v6, %v1716_v7  ;;  %v1727_v24 = vmul.f32 %v1716_v7, %v5012_v21 }
 0x961   : > { %4322 = vrot.lane.b32.xlu0 %v4321_v8, %s4459_s27 }
 0x9cf   : > { %v4318_v9 = vpop.permute.xlu1 %4317 }
 0x9d0   : > { %v4320_v10 = vunpack.i.h.bf16 %v4318_v9  ;;  %v4319_v11 = vunpack.i.l.bf16 %v4318_v9 }
 0x9d2   : > { %v4165_v15 = vpack.c.bf16 %v4320_v10, %v4319_v11 }
 0x9d3   : > { %v4323_v16 = vpop.permute.xlu0 %4322 }
 0x9d4   : > { %4167 = vmatprep.subr.msk.bf16.mxu1 %vm4991_vm4, %v4165_v15  ;;  %v4325_v17 = vunpack.i.h.bf16 %v4323_v16  ;;  %v4324_v18 = vunpack.i.l.bf16 %v4323_v16 }
 0x9d5   : > { %4170 = vmatpush3.bf16.xpose.msk.msra.mxu1 %vm4991_vm4, %v4165_v15 }
 0x9d6   : > { %v4171_v19 = vpack.c.bf16 %v4325_v17, %v4324_v18 }
 0x9d8   : > { %4173 = vmatprep.subr.msk.bf16.mxu1 %vm4991_vm4, %v4171_v19 }
 0x9dd   : > { %4176 = vmatpush3.bf16.xpose.msk.msra.mxu1 %vm4991_vm4, %v4171_v19 }
 0x9de   : > { %4185 = vmatprep.subr.bf16.mxu1 %v4456_v12 }
 0x9e4   : > { %3895 = vmatmul.mubr.msk.f32.vlgmr.msra.gmra.mrb[14].mxu1 %vm1377_vm2, %v1726_v22 }
 0x9e5   : > { %3897 = vmatprep.mubr.msk.f32.mxu1 %vm1377_vm2, %v1727_v24 }
 0x9e8   : > { %3898 = vmatmul.mubr.msk.f32.gmra.mrb[16].mxu1 %vm1377_vm2, %v1728_v25 }
 0x9e9   : > { %3930 = vmatprep.mubr.msk.f32.mxu1 %vm4457_vm1, %v4454_v13 }
 0xab7   : > { %v3896_v26 = vpop.f32.mrb[14].mxu1 }
 0xab8   : > { %v1847_v28 = vmul.f32 0.35355338, %v3896_v26  ;;  %v1827_v29 = vpop.f32.mrb[15].mxu1 }
 0xab9   : > { %v1846_v31 = vmul.f32 0.35355338, %v1827_v29 }
 0xaba   : > { %v1851_v32 = vadd.f32 %v1847_v28, %v5030_v27 }
 0xabb   : > { %v3899_v34 = vpop.f32.mrb[16].mxu1  ;;  %v1850_v35 = vadd.f32 %v1846_v31, %v5035_v30 }
 0xabc   : > { %v1849_v37 = vmul.f32 0.35355338, %v3899_v34  ;;  %v1837_v38 = vpop.f32.mrb[17].mxu1  ;;  %v1857_v39 = vsel %vm1377_vm2, %v1851_v32, -inf }
 0xabd   : > { %v1848_v42 = vmul.f32 0.35355338, %v1837_v38  ;;  %1858 = vmax.xlane.f32.xlu0 %v1857_v39  ;;  %v1854_v43 = vsel %vm1377_vm2, %v1850_v35, -inf  ;;  %v2174_v38 = vld [vmem:[%s5420_s17 + $0x8] sm:$0xff]  ;;  %v2175_v39 = vld [vmem:[%s5420_s17 + $0x10] sm:$0xff] }
 0xabe   : > { %1855 = vmax.xlane.f32.xlu1 %v1854_v43  ;;  %v1853_v44 = vadd.f32 %v1849_v37, %v5042_v36  ;;  %v2173_v37 = vld [vmem:[%s5420_s17] sm:$0xff]  ;;  %v2176_v43 = vld [vmem:[%s5420_s17 + $0x18] sm:$0xff] }
 0xabf   : > { %v1852_v45 = vadd.f32 %v1848_v42, %v5048_v40  ;;  %v4192_v42 = vpack.c.bf16 %v2174_v38, %v2173_v37  ;;  %v2383_v38 = vld [vmem:[%s5424_s21 + $0x10] sm:$0xff] }
 0xac0   : > { %v1863_v46 = vsel %vm1377_vm2, %v1853_v44, -inf }
 0xac1   : > { %1864 = vmax.xlane.f32.xlu0 %v1863_v46  ;;  %v1860_v47 = vsel %vm1377_vm2, %v1852_v45, -inf }
 0xac2   : > { %1861 = vmax.xlane.f32.xlu1 %v1860_v47 }
 0xb4a   : > { %v1859_v41 = vpop.xlane.xlu0 %1858 }
 0xb4b   : > { %v1867_v50 = vsub.f32 %v1851_v32, %v1859_v41  ;;  %v1856_v51 = vpop.xlane.xlu1 %1855 }
 0xb4c   : > { %v1866_v52 = vsub.f32 %v1850_v35, %v1856_v51 }
 0xb4d   : > { %v1872_v53 = vmul.f32 1.442695, %v1867_v50 }
 0xb4e   : > { %v1870_v54 = vmul.f32 1.442695, %v1866_v52  ;;  %v1865_v55 = vpop.xlane.xlu0 %1864 }
 0xb4f   : > { %4348 = vpow2.f32 %v1872_v53  ;;  %v1869_v56 = vsub.f32 %v1853_v44, %v1865_v55  ;;  %v1862_v58 = vpop.xlane.xlu1 %1861  ;;  %v4195_v44 = vpack.c.bf16 %v2176_v43, %v2175_v39  ;;  %v2384_v39 = vld [vmem:[%s5424_s21 + $0x18] sm:$0xff]  ;;  %v2385_v43 = vld [vmem:[%s5424_s21 + $0x20] sm:$0xff] }
 0xb50   : > { %4350 = vpow2.f32 %v1870_v54  ;;  %v1868_v59 = vsub.f32 %v1852_v45, %v1862_v58 }
 0xb51   : > { %v1876_v61 = vmul.f32 1.442695, %v1869_v56  ;;  %v5094_v56 = vld [vmem:[%s5415_s12] sm:$0xff] }
 0xb52   : > { %v1874_v2 = vmul.f32 1.442695, %v1868_v59 }
 0xb53   : > { %4352 = vpow2.f32 %v1876_v61 }
 0xb54   : > { %4354 = vpow2.f32 %v1874_v2  ;;  %v3553_v2 = vld [vmem:[%s5421_s18] ss:$0 sm:$0xff] }
 0xb59   : > { %v4349_v3 = vpop.eup %4348 }
 0xb5a   : > { %v4351_v4 = vpop.eup %4350  ;;  %v1881_v5 = vsel %vm1377_vm2, %v4349_v3, 0.0 }
 0xb5b   : > { %1882 = vadd.xlane.f32.xlu0 %v1881_v5  ;;  %v1878_v6 = vsel %vm1377_vm2, %v4351_v4, 0.0 }
 0xb5c   : > { %1879 = vadd.xlane.f32.xlu1 %v1878_v6 }
 0xb5d   : > { %v4353_v7 = vpop.eup %4352 }
 0xb5e   : > { %v4355_v8 = vpop.eup %4354  ;;  %v1887_v9 = vsel %vm1377_vm2, %v4353_v7, 0.0 }
 0xb5f   : > { %1888 = vadd.xlane.f32.xlu0 %v1887_v9  ;;  %v1884_v10 = vsel %vm1377_vm2, %v4355_v8, 0.0 }
 0xb60   : > { %1885 = vadd.xlane.f32.xlu1 %v1884_v10 }
 0xb71   : > { %1996 = vrot.lane.b32.xlu1 %v4948_v48, %s4455_s0 }
 0xbe8   : > { %v1883_v11 = vpop.xlane.xlu0 %1882 }
 0xbe9   : > { %4356 = vrcp.f32 %v1883_v11  ;;  %v1880_v15 = vpop.xlane.xlu1 %1879 }
 0xbea   : > { %4358 = vrcp.f32 %v1880_v15  ;;  %v2288_v15 = vld [vmem:[%s5422_s19] sm:$0xff] }
 0xbec   : > { %v1889_v16 = vpop.xlane.xlu0 %1888 }
 0xbed   : > { %4360 = vrcp.f32 %v1889_v16  ;;  %v1886_v17 = vpop.xlane.xlu1 %1885 }
 0xbee   : > { %4362 = vrcp.f32 %v1886_v17  ;;  %v2290_v17 = vld [vmem:[%s5422_s19 + $0x10] sm:$0xff] }
 0xbf1   : > { %v1997_v18 = vpop.permute.xlu1 %1996 }
 0xbf2   : > { %3914 = vmatprep.subr.mxu0 %v1997_v18 }
 0xbf3   : > { %v4357_v19 = vpop.eup %4356 }
 0xbf4   : > { %v4359_v22 = vpop.eup %4358  ;;  %v1895_v25 = vmul.f32 %v4357_v19, %v4349_v3 }
 0xbf5   : > { %v1894_v24 = vmul.f32 %v4359_v22, %v4351_v4 }
 0xbf7   : > { %v4361_v26 = vpop.eup %4360  ;;  %3908 = vmatprep.mubr.msk.f32.mxu0 %vm1377_vm2, %v1894_v24 }
 0xbf8   : > { %v4363_v28 = vpop.eup %4362  ;;  %3909 = vmatmul.mubr.msk.f32.vlgmr.msra.gmra.mrb[18].mxu0 %vm1377_vm2, %v1895_v25  ;;  %v1897_v29 = vmul.f32 %v4361_v26, %v4353_v7 }
 0xbf9   : > { %3915 = vmatpush3.msra.mxu0 %v1997_v18  ;;  %v1896_v48 = vmul.f32 %v4363_v28, %v4355_v8  ;;  %v2291_v18 = vld [vmem:[%s5422_s19 + $0x18] sm:$0xff]  ;;  %v3554_v28 = vld [vmem:[%s5428_s25] ss:$0 sm:$0xff] }
 0xbfa   : > { %4191 = vmatprep.subr.bf16.mxu0 %v4456_v12  ;;  %v4201_v19 = vpack.c.bf16 %v2291_v18, %v2290_v17 }
 0xbfb   : > { %3911 = vmatprep.mubr.msk.f32.mxu0 %vm1377_vm2, %v1896_v48 }
 0xbfc   : > { %3912 = vmatmul.mubr.msk.f32.gmra.mrb[20].mxu0 %vm1377_vm2, %v1897_v29  ;;  %v3555_v29 = vld [vmem:[%s5429_s26] ss:$0 sm:$0xff] }
 0xccb   : > { %v3910_v31 = vpop.f32.mrb[18].mxu0 }
 0xccc   : > { %v1976_v32 = vpop.f32.mrb[19].mxu0 }
 0xccd   : > { %3916 = vmatprep.mubr.msk.f32.mxu0 %vm1627_vm3, %v1976_v32 }
 0xcce   : > { %3917 = vmatmul.mubr.msk.f32.vlgmr.msra.gmra.mrb[22].mxu0 %vm1627_vm3, %v3910_v31 }
 0xccf   : > { %v3913_v34 = vpop.f32.mrb[20].mxu0  ;;  %4193 = vmatpush3.bf16.msra.mxu0 %v4192_v42  ;;  %v4207_v42 = vpack.c.bf16 %v2384_v39, %v2383_v38  ;;  %v3569_v39 = vld [vmem:[%s5419_s16 + $0x1] ss:$0 sm:$0xff] }
 0xcd0   : > { %v1986_v35 = vpop.f32.mrb[21].mxu0  ;;  %4194 = vmatprep.subr.bf16.mxu0 %v4456_v12 }
 0xcd1   : > { %3919 = vmatprep.mubr.msk.f32.mxu0 %vm1627_vm3, %v1986_v35  ;;  %v2382_v35 = vld [vmem:[%s5424_s21 + $0x8] sm:$0xff] }
 0xcd2   : > { %3920 = vmatmul.mubr.msk.f32.gmra.mrb[24].mxu0 %vm1627_vm3, %v3913_v34  ;;  %v2381_v34 = vld [vmem:[%s5424_s21] sm:$0xff] }
 0xcd3   : > { %3941 = vmatprep.mubr.msk.f32.mxu0 %vm4457_vm1, %v4454_v13  ;;  %4196 = vmatpush3.bf16.msra.mxu0 %v4195_v44  ;;  %v4204_v37 = vpack.c.bf16 %v2382_v35, %v2381_v34  ;;  %v2386_v44 = vld [vmem:[%s5424_s21 + $0x28] sm:$0xff]  ;;  %v3563_v35 = vld [vmem:[%s5427_s24 + $0x1] ss:$0 sm:$0xff] }
 0xcd4   : > { %4203 = vmatprep.subr.bf16.mxu0 %v4456_v12 }
 0xda1   : > { %v3918_v45 = vpop.f32.mrb[22].mxu0 }
 0xda2   : > { %v2097_v46 = vmul.f32 %v3918_v45, %v5007_v20  ;;  %v2077_v47 = vpop.f32.mrb[23].mxu0  ;;  %v4210_v45 = vpack.c.bf16 %v2386_v44, %v2385_v43 }
 0xda3   : > { %v2096_v41 = vmul.f32 %v2077_v47, %v4983_v1  ;;  %v2388_v47 = vld [vmem:[%s5424_s21 + $0x38] sm:$0xff] }
 0xda5   : > { %v4186_v50 = vpack.c.bf16 %v2097_v46, %v2096_v41  ;;  %v3921_v51 = vpop.f32.mrb[24].mxu0  ;;  %v2387_v46 = vld [vmem:[%s5424_s21 + $0x30] sm:$0xff] }
 0xda6   : > { %v2099_v52 = vmul.f32 %v3921_v51, %v5018_v23  ;;  %v2087_v53 = vpop.f32.mrb[25].mxu0  ;;  %v4213_v41 = vpack.c.bf16 %v2388_v47, %v2387_v46 }
 0xda7   : > { %v2098_v54 = vmul.f32 %v2087_v53, %v5012_v21  ;;  %4187 = vmatpush3.bf16.msra.mxu1 %v4186_v50  ;;  %v3556_v50 = vld [vmem:[%s5423_s20] ss:$0 sm:$0xff] }
 0xda8   : > { %4188 = vmatprep.subr.bf16.mxu1 %v4456_v12 }
 0xda9   : > { %v4189_v55 = vpack.c.bf16 %v2099_v52, %v2098_v54 }
 0xdab   : > { %4190 = vmatpush3.bf16.msra.mxu1 %v4189_v55 }
 0xdac   : > { %4197 = vmatprep.subr.bf16.mxu1 %v4456_v12 }
 0xdae   : > { %3931 = vmatmul.mubr.msk.f32.vlgmr.msra.gmra.mrb[18].mxu1 %vm1377_vm2, %v5094_v56 }
 0xdaf   : > { %3952 = vmatprep.mubr.msk.f32.mxu1 %vm4457_vm1, %v4454_v13 }
 0xe81   : > { %v2169_v58 = vpop.f32.mrb[18].mxu1 }
 0xe82   : > { %3942 = vmatmul.mubr.msk.f32.vlgmr.msra.gmra.mrb[26].mxu0 %vm1377_vm2, %v2169_v58  ;;  %v3932_v59 = vpop.f32.mrb[19].mxu1 }
 0xe83   : > { %3971 = vmatprep.mubr.msk.f32.mxu0 %vm4457_vm1, %v4454_v13  ;;  %4205 = vmatpush3.bf16.msra.mxu0 %v4204_v37 }
 0xe84   : > { %4206 = vmatprep.subr.bf16.mxu0 %v4456_v12 }
 0xe87   : > { %4208 = vmatpush3.bf16.msra.mxu0 %v4207_v42 }
 0xe88   : > { %4209 = vmatprep.subr.bf16.mxu0 %v4456_v12 }
 0xe8b   : > { %4211 = vmatpush3.bf16.msra.mxu0 %v4210_v45 }
 0xe8c   : > { %4212 = vmatprep.subr.bf16.mxu0 %v4456_v12 }
 0xe8f   : > { %4214 = vmatpush3.bf16.msra.mxu0 %v4213_v41 }
 0xf55   : > { %v2246_v61 = vpop.f32.mrb[26].mxu0 }
 0xf56   : > { %v2250_v3 = vadd.f32 %v2246_v61, %v4907_v33  ;;  %v3943_v4 = vpop.f32.mrb[27].mxu0  ;;  %v2289_v33 = vld [vmem:[%s5422_s19 + $0x8] sm:$0xff] }
 0xf57   : > { %v4198_v16 = vpack.c.bf16 %v2289_v33, %v2288_v15 }
 0xf58   : > { %v5108_v5 = vadd.f32 %v3553_v2, %v2250_v3 }
 0xf59   : > { %4199 = vmatpush3.bf16.msra.mxu1 %v4198_v16 }
 0xf5a   : > { %v2259_v6 = vsel %vm1377_vm2, %v5108_v5, 0.0  ;;  %4200 = vmatprep.subr.bf16.mxu1 %v4456_v12 }
 0xf5b   : > { %2260 = vadd.xlane.f32.xlu0 %v2259_v6 }
 0xf5d   : > { %4202 = vmatpush3.bf16.msra.mxu1 %v4201_v19  ;;  %v3564_v19 = vld [vmem:[%s5418_s15 + $0x20] sm:$0xff] }
 0xf5e   : > { %4215 = vmatprep.subr.bf16.mxu1 %v4456_v12 }
 0xfe8   : > { %v2261_v7 = vpop.xlane.xlu0 %2260 }
 0xfe9   : > { %v2262_v8 = vmul.f32 0.03125, %v2261_v7 }
 0xfeb   : > { %v2263_v9 = vsub.f32 %v5108_v5, %v2262_v8  ;;  %v3559_v8 = vld [vmem:[%s5425_s22] ss:$0 sm:$0xff] }
 0xfed   : > { %v2264_v10 = vmul.f32 %v2263_v9, %v2263_v9 }
 0xfef   : > { %v2265_v11 = vsel %vm1377_vm2, %v2264_v10, 0.0 }
 0xff0   : > { %2266 = vadd.xlane.f32.xlu0 %v2265_v11 }
0x107d   : > { %v2267_v22 = vpop.xlane.xlu0 %2266 }
0x107e   : > { %v2268_v24 = vmul.f32 0.03125, %v2267_v22 }
0x1080   : > { %v2269_v25 = vadd.f32 1e-05, %v2268_v24  ;;  %v3566_v24 = vld [vmem:[%s5418_s15 + $0x30] sm:$0xff] }
0x1082   : > { %4364 = vrsqrt.f32 %v2269_v25  ;;  %v3567_v25 = vld [vmem:[%s5418_s15 + $0x38] sm:$0xff] }
0x108c   : > { %v4365_v26 = vpop.eup %4364 }
0x108d   : > { %v2271_v48 = vmul.f32 %v4365_v26, %v2263_v9  ;;  %v4219_v26 = vpack.c.bf16 %v3567_v25, %v3566_v24 }
0x108f   : > { %v2279_v31 = vmul.f32 %v3554_v28, %v2271_v48 }
0x1091   : > { %v2287_v32 = vadd.f32 %v3555_v29, %v2279_v31 }
0x1093   : > { %3953 = vmatmul.mubr.msk.f32.vlgmr.msra.gmra.mrb[20].mxu1 %vm1377_vm2, %v2287_v32  ;;  %v3561_v32 = vld [vmem:[%s5426_s23 + $0x1] ss:$0 sm:$0xff] }
0x1094   : > { %3982 = vmatprep.mubr.msk.f32.mxu1 %vm4457_vm1, %v4454_v13 }
0x1166   : > { %v2368_v51 = vpop.f32.mrb[20].mxu1 }
0x1167   : > { %v2369_v52 = vadd.f32 %v3556_v50, %v2368_v51  ;;  %v3954_v53 = vpop.f32.mrb[21].mxu1 }
0x1169   : > { %v2372_v54 = vmul.f32 %v2369_v52, %v2369_v52 }
0x116b   : > { %v2373_v55 = vmul.f32 %v2372_v54, %v2369_v52 }
0x116d   : > { %v2374_v58 = vmul.f32 0.044715, %v2373_v55 }
0x116f   : > { %v2375_v59 = vadd.f32 %v2374_v58, %v2369_v52 }
0x1171   : > { %v2376_v61 = vmul.f32 0.7978846, %v2375_v59 }
0x1173   : > { %4366 = vtanh.f32 %v2376_v61 }
0x117d   : > { %v4367_v2 = vpop.eup %4366 }
0x117e   : > { %v2378_v3 = vadd.f32 1.0, %v4367_v2 }
0x1180   : > { %v2379_v4 = vmul.f32 0.5, %v2378_v3 }
0x1182   : > { %v2380_v6 = vmul.f32 %v2379_v4, %v2369_v52 }
0x1184   : > { %3972 = vmatmul.mubr.msk.f32.vlgmr.msra.gmra.mrb[28].mxu0 %vm2389_vm5, %v2380_v6 }
0x1185   : > { %3987 = vmatprep.mubr.msk.f32.mxu0 %vm1627_vm3, %v4936_v57 }
0x1257   : > { %v2459_v7 = vpop.f32.mrb[28].mxu0 }
0x1258   : > { %v2463_v9 = vadd.f32 %v2459_v7, %v5108_v5  ;;  %v3973_v10 = vpop.f32.mrb[29].mxu0  ;;  %v3565_v5 = vld [vmem:[%s5418_s15 + $0x28] sm:$0xff] }
0x1259   : > { %v4216_v22 = vpack.c.bf16 %v3565_v5, %v3564_v19 }
0x125a   : > { %v5174_v11 = vadd.f32 %v3559_v8, %v2463_v9 }
0x125b   : > { %4217 = vmatpush3.bf16.msra.mxu1 %v4216_v22 }
0x125c   : > { %v2472_v15 = vsel %vm1377_vm2, %v5174_v11, 0.0  ;;  %4218 = vmatprep.subr.bf16.mxu1 %v4456_v12 }
0x125d   : > { %2473 = vadd.xlane.f32.xlu0 %v2472_v15 }
0x125f   : > { %4220 = vmatpush3.bf16.msra.mxu1 %v4219_v26 }
0x1260   : > { %4234 = vmatprep.subr.bf16.mxu1 %v4952_v62 }
0x12ea   : > { %v2474_v33 = vpop.xlane.xlu0 %2473 }
0x12eb   : > { %v2475_v16 = vmul.f32 0.03125, %v2474_v33 }
0x12ed   : > { %v2476_v17 = vsub.f32 %v5174_v11, %v2475_v16 }
0x12ef   : > { %v2477_v18 = vmul.f32 %v2476_v17, %v2476_v17 }
0x12f1   : > { %v2478_v57 = vsel %vm1377_vm2, %v2477_v18, 0.0 }
0x12f2   : > { %2479 = vadd.xlane.f32.xlu0 %v2478_v57 }
0x137f   : > { %v2480_v28 = vpop.xlane.xlu0 %2479 }
0x1380   : > { %v2481_v48 = vmul.f32 0.03125, %v2480_v28 }
0x1382   : > { %v2482_v29 = vadd.f32 1e-05, %v2481_v48 }
0x1384   : > { %4368 = vrsqrt.f32 %v2482_v29 }
0x138e   : > { %v4369_v31 = vpop.eup %4368 }
0x138f   : > { %v2484_v34 = vmul.f32 %v4369_v31, %v2476_v17 }
0x1391   : > { %v2493_v37 = vmul.f32 %v3561_v32, %v2484_v34 }
0x1393   : > { %v2502_v38 = vadd.f32 %v3563_v35, %v2493_v37 }
0x1395   : > { %3983 = vmatmul.mubr.msk.f32.vlgmr.msra.gmra.mrb[22].mxu1 %vm1377_vm2, %v2502_v38 }
0x1396   : > { %4236 = vmatpush3.bf16.msra.mxu1 %v4952_v62 }
0x1397   : > { %4238 = vmatprep.subr.bf16.mxu1 %v4967_v0 }
0x139a   : > { %4240 = vmatpush3.bf16.msra.mxu1 %v4967_v0 }
0x1468   : > { %v2585_v42 = vpop.f32.mrb[22].mxu1 }
0x1469   : > { %v5207_v43 = vadd.f32 %v3569_v39, %v2585_v42  ;;  %v3984_v44 = vpop.f32.mrb[23].mxu1 }
0x146b   : > { %3985 = vmatprep.subr.mxu0 %v5207_v43 }
0x146c   : > { %3986 = vmatpush3.msra.mxu0 %v5207_v43 }
0x146d   : > { %3988 = vmatmul.mubr.msk.f32.vlgmr.msra.gmra.mrb[30].mxu0 %vm1627_vm3, %v4946_v60 }
0x146e   : > { %3990 = vmatprep.mubr.msk.f32.mxu0 %vm1627_vm3, %v4957_v63 }
0x1471   : > { %3991 = vmatmul.mubr.msk.f32.gmra.mrb[32].mxu0 %vm1627_vm3, %v4962_v49 }
0x1540   : > { %v3989_v62 = vpop.f32.mrb[30].mxu0 }
0x1541   : > { %v2655_v0 = vpop.f32.mrb[31].mxu0  ;;  %v2675_v58 = vmul.f32 %v3989_v62, %v5007_v20 }
0x1542   : > { %v4326_v45 = vpack.i.bf16 %v3989_v62, %v2655_v0  ;;  %v2674_v46 = vmul.f32 %v2655_v0, %v4983_v1 }
0x1544   : > { %4327 = vrot.lane.b32.xlu1 %v4326_v45, %s4459_s27  ;;  %v3992_v47 = vpop.f32.mrb[32].mxu0  ;;  %4001 = vmatprep.mubr.msk.f32.mxu0 %vm1377_vm2, %v2674_v46 }
0x1545   : > { %v2665_v41 = vpop.f32.mrb[33].mxu0  ;;  %v2677_v61 = vmul.f32 %v3992_v47, %v5018_v23 }
0x1546   : > { %v4331_v50 = vpack.i.bf16 %v3992_v47, %v2665_v41  ;;  %v2676_v59 = vmul.f32 %v2665_v41, %v5012_v21 }
0x1548   : > { %4332 = vrot.lane.b32.xlu0 %v4331_v50, %s4459_s27 }
0x15b6   : > { %v4328_v60 = vpop.permute.xlu1 %4327 }
0x15b7   : > { %v4330_v51 = vunpack.i.h.bf16 %v4328_v60  ;;  %v4329_v63 = vunpack.i.l.bf16 %v4328_v60 }
0x15b9   : > { %v4221_v52 = vpack.c.bf16 %v4330_v51, %v4329_v63 }
0x15ba   : > { %v4333_v53 = vpop.permute.xlu0 %4332 }
0x15bb   : > { %4223 = vmatprep.subr.msk.bf16.mxu0 %vm4991_vm4, %v4221_v52  ;;  %v4335_v49 = vunpack.i.h.bf16 %v4333_v53  ;;  %v4334_v54 = vunpack.i.l.bf16 %v4333_v53 }
0x15bc   : > { %4226 = vmatpush3.bf16.xpose.msk.msra.mxu0 %vm4991_vm4, %v4221_v52 }
0x15bd   : > { %v4227_v55 = vpack.c.bf16 %v4335_v49, %v4334_v54 }
0x15bf   : > { %4229 = vmatprep.subr.msk.bf16.mxu0 %vm4991_vm4, %v4227_v55 }
0x15c4   : > { %4232 = vmatpush3.bf16.xpose.msk.msra.mxu0 %vm4991_vm4, %v4227_v55 }
0x15c5   : > { %4241 = vmatprep.subr.bf16.mxu0 %v4456_v12 }
0x15cb   : > { %4002 = vmatmul.mubr.msk.f32.vlgmr.msra.gmra.mrb[34].mxu0 %vm1377_vm2, %v2675_v58  ;;  %v3592_v58 = vld [vmem:[%s5420_s17 + $0x20] sm:$0xff] }
0x15cc   : > { %4004 = vmatprep.mubr.msk.f32.mxu0 %vm1377_vm2, %v2676_v59  ;;  %v3593_v59 = vld [vmem:[%s5420_s17 + $0x28] sm:$0xff] }
0x15cf   : > { %4005 = vmatmul.mubr.msk.f32.gmra.mrb[36].mxu0 %vm1377_vm2, %v2677_v61  ;;  %v3594_v61 = vld [vmem:[%s5420_s17 + $0x30] sm:$0xff] }
0x15d0   : > { %4037 = vmatprep.mubr.msk.f32.mxu0 %vm4457_vm1, %v4454_v13 }
0x169e   : > { %v4003_v2 = vpop.f32.mrb[34].mxu0 }
0x169f   : > { %v2796_v14 = vmul.f32 0.35355338, %v4003_v2  ;;  %v2776_v3 = vpop.f32.mrb[35].mxu0  ;;  %v4248_v2 = vpack.c.bf16 %v3593_v59, %v3592_v58 }
0x16a0   : > { %v2795_v4 = vmul.f32 0.35355338, %v2776_v3 }
0x16a1   : > { %v2800_v6 = vadd.f32 %v2796_v14, %v5030_v27  ;;  %v3595_v14 = vld [vmem:[%s5420_s17 + $0x38] sm:$0xff] }
0x16a2   : > { %v4006_v7 = vpop.f32.mrb[36].mxu0  ;;  %v2799_v8 = vadd.f32 %v2795_v4, %v5035_v30  ;;  %v4251_v3 = vpack.c.bf16 %v3595_v14, %v3594_v61 }
0x16a3   : > { %v2786_v9 = vpop.f32.mrb[37].mxu0  ;;  %v2806_v10 = vsel %vm1377_vm2, %v2800_v6, -inf  ;;  %v2798_v15 = vmul.f32 0.35355338, %v4006_v7 }
0x16a4   : > { %v2797_v33 = vmul.f32 0.35355338, %v2786_v9  ;;  %2807 = vmax.xlane.f32.xlu0 %v2806_v10  ;;  %v2803_v16 = vsel %vm1377_vm2, %v2799_v8, -inf }
0x16a5   : > { %2804 = vmax.xlane.f32.xlu1 %v2803_v16  ;;  %v2802_v57 = vadd.f32 %v2798_v15, %v5042_v36 }
0x16a6   : > { %v2801_v17 = vadd.f32 %v2797_v33, %v5048_v40 }
0x16a7   : > { %v2812_v27 = vsel %vm1377_vm2, %v2802_v57, -inf }
0x16a8   : > { %v2809_v18 = vsel %vm1377_vm2, %v2801_v17, -inf }
0x16a9   : > { %2810 = vmax.xlane.f32.xlu1 %v2809_v18 }
0x16ad   : > { %2813 = vmax.xlane.f32.xlu1 %v2812_v27 }
0x1731   : > { %v2808_v30 = vpop.xlane.xlu0 %2807 }
0x1732   : > { %v2816_v19 = vsub.f32 %v2800_v6, %v2808_v30  ;;  %v2805_v5 = vpop.xlane.xlu1 %2804 }
0x1733   : > { %v2815_v22 = vsub.f32 %v2799_v8, %v2805_v5 }
0x1734   : > { %v2821_v24 = vmul.f32 1.442695, %v2816_v19 }
0x1735   : > { %v2819_v25 = vmul.f32 1.442695, %v2815_v22 }
0x1736   : > { %v2811_v26 = vpop.xlane.xlu1 %2810 }
0x1737   : > { %4370 = vpow2.f32 %v2819_v25  ;;  %v2817_v28 = vsub.f32 %v2801_v17, %v2811_v26  ;;  %v3605_v26 = vld [vmem:[%s5422_s19 + $0x30] sm:$0xff] }
0x1738   : > { %4372 = vpow2.f32 %v2821_v24  ;;  %v3603_v24 = vld [vmem:[%s5422_s19 + $0x20] sm:$0xff] }
0x1739   : > { %v2823_v48 = vmul.f32 1.442695, %v2817_v28  ;;  %v3606_v28 = vld [vmem:[%s5422_s19 + $0x38] sm:$0xff] }
0x173a   : > { %v2814_v40 = vpop.xlane.xlu1 %2813 }
0x173b   : > { %4374 = vpow2.f32 %v2823_v48  ;;  %v2818_v29 = vsub.f32 %v2802_v57, %v2814_v40  ;;  %v4257_v48 = vpack.c.bf16 %v3606_v28, %v3605_v26 }
0x173d   : > { %v2825_v31 = vmul.f32 1.442695, %v2818_v29 }
0x173f   : > { %4376 = vpow2.f32 %v2825_v31 }
0x1741   : > { %v4371_v36 = vpop.eup %4370 }
0x1742   : > { %v2827_v32 = vsel %vm1377_vm2, %v4371_v36, 0.0  ;;  %v4373_v34 = vpop.eup %4372 }
0x1743   : > { %2828 = vadd.xlane.f32.xlu1 %v2827_v32  ;;  %v2830_v37 = vsel %vm1377_vm2, %v4373_v34, 0.0  ;;  %v3600_v32 = vld [vmem:[%s5428_s25 + $0x1] ss:$0 sm:$0xff] }
0x1745   : > { %v4375_v35 = vpop.eup %4374 }
0x1746   : > { %v2833_v38 = vsel %vm1377_vm2, %v4375_v35, 0.0 }
0x1747   : > { %2831 = vadd.xlane.f32.xlu1 %v2830_v37  ;;  %2834 = vadd.xlane.f32.xlu0 %v2833_v38 }
0x1749   : > { %v4377_v39 = vpop.eup %4376 }
0x174a   : > { %v2836_v42 = vsel %vm1377_vm2, %v4377_v39, 0.0 }
0x174b   : > { %2837 = vadd.xlane.f32.xlu1 %v2836_v42  ;;  %v3611_v42 = vld [vmem:[%s5424_s21 + $0x48] sm:$0xff] }
0x175d   : > { %2945 = vrot.lane.b32.xlu0 %v5207_v43, %s4455_s0  ;;  %s809_s0 = sand.u32 1, %s5488_s4  }
0x175e   : > { %s810_s30 = scalar_lea.vmem [#allocation2], %s809_s0  ;;  %s3437_s4 = scalar_lea.sflag [#allocation3], %s809_s0 }
0x175f   : > { %s3449_s1 = sshll.u32 %s810_s30, 4  ;;  %s5363_s1 = int_to_ptr.vmem [resolvable:$true] %s3449_s1 }
0x1760   : > { %s4390_s3 = scalar_lea.vmem %s5363_s1, 16  ;;  %p4397_p0 = scmp.lt.s32.totalorder %s5363_s1, %s4395_s5 }
0x1761   : > { %p4391_p11 = scmp.ne.s32.totalorder %s5363_s1, %s4390_s3  ;;  %p4398_p1 = scmp.lt.s32.totalorder %s4396_s6, %s4390_s3 }
0x1763   : > { %p4392_p12 = pnand %p4391_p11, %p4639_p5  ;;  %p4399_p2 = por %p4398_p1, %p4397_p0 }
0x1765   : > { %p4393_p13 = pneg %p4392_p12 }
0x1767   : > { %p4400_p3 = pnand %p4399_p2, %p4393_p13 }
0x17d0   : > { %v2829_v44 = vpop.xlane.xlu1 %2828 }
0x17d1   : > { %4378 = vrcp.f32 %v2829_v44 }
0x17d4   : > { %v2835_v62 = vpop.xlane.xlu0 %2834  ;;  %v2832_v0 = vpop.xlane.xlu1 %2831 }
0x17d5   : > { %4380 = vrcp.f32 %v2835_v62  ;;  %v3612_v62 = vld [vmem:[%s5424_s21 + $0x50] sm:$0xff] }
0x17d6   : > { %4382 = vrcp.f32 %v2832_v0  ;;  %v3613_v0 = vld [vmem:[%s5424_s21 + $0x58] sm:$0xff] }
0x17d8   : > { %v2946_v45 = vpop.permute.xlu0 %2945  ;;  %v2838_v46 = vpop.xlane.xlu1 %2837 }
0x17d9   : > { %4384 = vrcp.f32 %v2838_v46  ;;  %4021 = vmatprep.subr.mxu1 %v2946_v45  ;;  %v3614_v46 = vld [vmem:[%s5424_s21 + $0x60] sm:$0xff] }
0x17db   : > { %v4379_v47 = vpop.eup %4378 }
0x17dc   : > { %v2843_v41 = vmul.f32 %v4379_v47, %v4371_v36  ;;  %v3615_v47 = vld [vmem:[%s5424_s21 + $0x68] sm:$0xff] }
0x17de   : > { %4015 = vmatprep.mubr.msk.f32.mxu1 %vm1377_vm2, %v2843_v41  ;;  %v4266_v41 = vpack.c.bf16 %v3615_v47, %v3614_v46 }
0x17df   : > { %v4381_v50 = vpop.eup %4380 }
0x17e0   : > { %v4383_v60 = vpop.eup %4382  ;;  %v2845_v51 = vmul.f32 %v4381_v50, %v4375_v35  ;;  %v3602_v35 = vld [vmem:[%s5429_s26 + $0x1] ss:$0 sm:$0xff]  ;;  %v3616_v50 = vld [vmem:[%s5424_s21 + $0x70] sm:$0xff] }
0x17e1   : > { %v2844_v63 = vmul.f32 %v4383_v60, %v4373_v34  ;;  %v3617_v60 = vld [vmem:[%s5424_s21 + $0x78] sm:$0xff] }
0x17e3   : > { %v4385_v52 = vpop.eup %4384  ;;  %4016 = vmatmul.mubr.msk.f32.vlgmr.msra.gmra.mrb[24].mxu1 %vm1377_vm2, %v2844_v63  ;;  %v3608_v63 = vld [vmem:[%s5423_s20 + $0x1] ss:$0 sm:$0xff] }
0x17e4   : > { %4022 = vmatpush3.msra.mxu1 %v2946_v45  ;;  %4018 = vmatprep.mubr.msk.f32.mxu1 %vm1377_vm2, %v2845_v51  ;;  %v2846_v43 = vmul.f32 %v4385_v52, %v4377_v39  ;;  %v3610_v39 = vld [vmem:[%s5424_s21 + $0x40] sm:$0xff]  ;;  %v4263_v45 = vpack.c.bf16 %v3613_v0, %v3612_v62  ;;  %v4269_v51 = vpack.c.bf16 %v3617_v60, %v3616_v50 }
0x17e5   : > { %4247 = vmatprep.subr.bf16.mxu1 %v4456_v12  ;;  %v4260_v44 = vpack.c.bf16 %v3611_v42, %v3610_v39 }
0x17e7   : > { %4019 = vmatmul.mubr.msk.f32.gmra.mrb[26].mxu1 %vm1377_vm2, %v2846_v43 }
0x18b6   : > { %v4017_v53 = vpop.f32.mrb[24].mxu1 }
0x18b7   : > { %v2925_v49 = vpop.f32.mrb[25].mxu1 }
0x18b8   : > { %4023 = vmatprep.mubr.msk.f32.mxu1 %vm1627_vm3, %v2925_v49 }
0x18b9   : > { %4024 = vmatmul.mubr.msk.f32.vlgmr.msra.gmra.mrb[28].mxu1 %vm1627_vm3, %v4017_v53 }
0x18ba   : > { %v4020_v54 = vpop.f32.mrb[26].mxu1  ;;  %4249 = vmatpush3.bf16.msra.mxu1 %v4248_v2 }
0x18bb   : > { %v2935_v55 = vpop.f32.mrb[27].mxu1  ;;  %4250 = vmatprep.subr.bf16.mxu1 %v4456_v12 }
0x18bc   : > { %4026 = vmatprep.mubr.msk.f32.mxu1 %vm1627_vm3, %v2935_v55 }
0x18bd   : > { %4027 = vmatmul.mubr.msk.f32.gmra.mrb[30].mxu1 %vm1627_vm3, %v4020_v54 }
0x18be   : > { %4048 = vmatprep.mubr.msk.f32.mxu1 %vm4457_vm1, %v4454_v13  ;;  %4252 = vmatpush3.bf16.msra.mxu1 %v4251_v3 }
0x18bf   : > { %4259 = vmatprep.subr.bf16.mxu1 %v4456_v12 }
0x198c   : > { %v4025_v4 = vpop.f32.mrb[28].mxu1 }
0x198d   : > { %v3046_v6 = vmul.f32 %v4025_v4, %v5007_v20  ;;  %v3026_v7 = vpop.f32.mrb[29].mxu1  ;;  %v3620_v4 = vld [vmem:[%s5425_s22 + $0x1] ss:$0 sm:$0xff] }
0x198e   : > { %v3045_v8 = vmul.f32 %v3026_v7, %v4983_v1 }
0x1990   : > { %v4242_v9 = vpack.c.bf16 %v3046_v6, %v3045_v8  ;;  %v4028_v10 = vpop.f32.mrb[30].mxu1 }
0x1991   : > { %v3048_v15 = vmul.f32 %v4028_v10, %v5018_v23  ;;  %v3036_v33 = vpop.f32.mrb[31].mxu1  ;;  %v3598_v23 = vld [vmem:[%s5421_s18 + $0x1] ss:$0 sm:$0xff] }
0x1992   : > { %v3047_v16 = vmul.f32 %v3036_v33, %v5012_v21  ;;  %4243 = vmatpush3.bf16.msra.mxu0 %v4242_v9 }
0x1993   : > { %4244 = vmatprep.subr.bf16.mxu0 %v4456_v12 }
0x1994   : > { %v4245_v17 = vpack.c.bf16 %v3048_v15, %v3047_v16 }
0x1996   : > { %4246 = vmatpush3.bf16.msra.mxu0 %v4245_v17 }
0x1997   : > { %4253 = vmatprep.subr.bf16.mxu0 %v4456_v12 }
0x1999   : > { %4038 = vmatmul.mubr.msk.f32.vlgmr.msra.gmra.mrb[38].mxu0 %vm1377_vm2, %v5094_v56 }
0x199a   : > { %4059 = vmatprep.mubr.msk.f32.mxu0 %vm4457_vm1, %v4454_v13 }
0x1a6c   : > { %v3115_v1 = vpop.f32.mrb[38].mxu0 }
0x1a6d   : > { %4049 = vmatmul.mubr.msk.f32.vlgmr.msra.gmra.mrb[32].mxu1 %vm1377_vm2, %v3115_v1  ;;  %v4039_v20 = vpop.f32.mrb[39].mxu0 }
0x1a6e   : > { %4078 = vmatprep.mubr.msk.f32.mxu1 %vm4457_vm1, %v4454_v13  ;;  %4261 = vmatpush3.bf16.msra.mxu1 %v4260_v44 }
0x1a6f   : > { %4262 = vmatprep.subr.bf16.mxu1 %v4456_v12 }
0x1a72   : > { %4264 = vmatpush3.bf16.msra.mxu1 %v4263_v45 }
0x1a73   : > { %4265 = vmatprep.subr.bf16.mxu1 %v4456_v12 }
0x1a76   : > { %4267 = vmatpush3.bf16.msra.mxu1 %v4266_v41 }
0x1a77   : > { %4268 = vmatprep.subr.bf16.mxu1 %v4456_v12 }
0x1a7a   : > { %4270 = vmatpush3.bf16.msra.mxu1 %v4269_v51 }
0x1b40   : > { %v3193_v21 = vpop.f32.mrb[32].mxu1 }
0x1b41   : > { %v3197_v18 = vadd.f32 %v3193_v21, %v5174_v11  ;;  %v4050_v57 = vpop.f32.mrb[33].mxu1  ;;  %v3604_v11 = vld [vmem:[%s5422_s19 + $0x28] sm:$0xff] }
0x1b42   : > { %v4254_v25 = vpack.c.bf16 %v3604_v11, %v3603_v24 }
0x1b43   : > { %v5294_v27 = vadd.f32 %v3598_v23, %v3197_v18 }
0x1b44   : > { %4255 = vmatpush3.bf16.msra.mxu0 %v4254_v25 }
0x1b45   : > { %v3207_v56 = vsel %vm1377_vm2, %v5294_v27, 0.0  ;;  %4256 = vmatprep.subr.bf16.mxu0 %v4456_v12 }
0x1b46   : > { %3208 = vadd.xlane.f32.xlu1 %v3207_v56 }
0x1b48   : > { %4258 = vmatpush3.bf16.msra.mxu0 %v4257_v48 }
0x1bd3   : > { %v3209_v30 = vpop.xlane.xlu1 %3208 }
0x1bd4   : > { %v3210_v19 = vmul.f32 0.03125, %v3209_v30 }
0x1bd6   : > { %v3211_v5 = vsub.f32 %v5294_v27, %v3210_v19 }
0x1bd8   : > { %v3212_v22 = vmul.f32 %v3211_v5, %v3211_v5 }
0x1bda   : > { %v3213_v13 = vsel %vm1377_vm2, %v3212_v22, 0.0 }
0x1bdb   : > { %3214 = vadd.xlane.f32.xlu1 %v3213_v13 }
0x1c68   : > { %v3215_v40 = vpop.xlane.xlu1 %3214 }
0x1c69   : > { %v3216_v29 = vmul.f32 0.03125, %v3215_v40 }
0x1c6b   : > { %v3217_v31 = vadd.f32 1e-05, %v3216_v29 }
0x1c6d   : > { %4386 = vrsqrt.f32 %v3217_v31 }
0x1c77   : > { %v4387_v36 = vpop.eup %4386 }
0x1c78   : > { %v3219_v34 = vmul.f32 %v4387_v36, %v3211_v5 }
0x1c7a   : > { %v3228_v37 = vmul.f32 %v3600_v32, %v3219_v34 }
0x1c7c   : > { %v3237_v38 = vadd.f32 %v3602_v35, %v3228_v37 }
0x1c7e   : > { %4060 = vmatmul.mubr.msk.f32.vlgmr.msra.gmra.mrb[40].mxu0 %vm1377_vm2, %v3237_v38 }
0x1d51   : > { %v3320_v52 = vpop.f32.mrb[40].mxu0 }
0x1d52   : > { %v3321_v43 = vadd.f32 %v3608_v63, %v3320_v52  ;;  %v4061_v53 = vpop.f32.mrb[41].mxu0 }
0x1d54   : > { %v3324_v49 = vmul.f32 %v3321_v43, %v3321_v43 }
0x1d56   : > { %v3325_v54 = vmul.f32 %v3324_v49, %v3321_v43 }
0x1d58   : > { %v3326_v12 = vmul.f32 0.044715, %v3325_v54 }
0x1d5a   : > { %v3327_v55 = vadd.f32 %v3326_v12, %v3321_v43 }
0x1d5c   : > { %v3328_v58 = vmul.f32 0.7978846, %v3327_v55 }
0x1d5e   : > { %4388 = vtanh.f32 %v3328_v58 }
0x1d68   : > { %v4389_v59 = vpop.eup %4388 }
0x1d69   : > { %v3330_v61 = vadd.f32 1.0, %v4389_v59 }
0x1d6b   : > { %v3331_v2 = vmul.f32 0.5, %v3330_v61 }
0x1d6d   : > { %v3332_v14 = vmul.f32 %v3331_v2, %v3321_v43 }
0x1d6f   : > { %4079 = vmatmul.mubr.msk.f32.vlgmr.msra.gmra.mrb[34].mxu1 %vm2389_vm5, %v3332_v14 }
0x1e42   : > { %v3411_v3 = vpop.f32.mrb[34].mxu1 }
0x1e43   : > { %v3415_v6 = vadd.f32 %v3411_v3, %v5294_v27  ;;  %v4080_v7 = vpop.f32.mrb[35].mxu1 }
0x1e45   : > { %v3424_v8 = vadd.f32 %v3620_v4, %v3415_v6 }
0x1e47   : > { %v3425_v9 = vsel %vm1377_vm2, %v3424_v8, 0.0 }
0x1e48   : > { %v3426_v10 = vrot.slane %v3425_v9, 4 }
0x1e4a   : > { %v3427_v15 = vadd.f32 %v3426_v10, %v3425_v9 }
0x1e4c   : > { %v3428_v33 = vrot.slane %v3427_v15, 2 }
0x1e4e   : > { %v3429_v16 = vadd.f32 %v3428_v33, %v3427_v15 }
0x1e50   : > { %v3430_v17 = vrot.slane %v3429_v16, 1 }
0x1e52   : > { %v3431_v1 = vadd.f32 %v3430_v17, %v3429_v16 }
0x1e54   : > { %v3433_v20 = vmul.f32 0.125, %v3431_v1 }
0x1e56   : > { %3435 = vst.msk [vmem:[%s810_s30] sm:$0x1] %vm3434_vm6, %v3433_v20 }
0x1e57   : > { %4403 = shalt.err (!%p4400_p3)
}
0x1e58   : > { %s4404_s0 = scalar_lea.hbm %s5361_s7, 16  ;;  %s4408_s29 = scalar_lea.hbm %s5491_s10, 32 }
0x1e59   : > { %p4405_p4 = scmp.ne.s32.totalorder %s5361_s7, %s4404_s0  ;;  %p4409_p9 = scmp.lt.u32.totalorder %s5361_s7, %s5491_s10 }
0x1e5a   : > { %p4410_p10 = scmp.lt.u32.totalorder %s4408_s29, %s4404_s0  ;;  %p4412_p12 = scmp.lt.u32.totalorder %s4404_s0, %s5361_s7 }
0x1e5b   : > { %p4406_p7 = pnand %p4405_p4, %p4639_p5 }
0x1e5c   : > { %p4411_p11 = por %p4410_p10, %p4409_p9 }
0x1e5d   : > { %p4407_p8 = pneg %p4406_p7 }
0x1e5e   : > { %p4413_p13 = por %p4412_p12, %p4411_p11 }
0x1e60   : > { %p4414_p0 = pnand %p4413_p13, %p4407_p8 }
0x1e62   : > { %4417 = shalt.err (!%p4414_p0)
}
0x1e63   : > { %4271 = dma.vmem_to_hbm [thread:$0]  (%p4639_p5), %s5363_s1, 16, %s5361_s7, %s3437_s4  }
0x1e64 PF: > { %s5492_s3 = sld [smem:[#allocation8_spill]]  ;;  %s5493_s6 = sld [smem:[#allocation5_spill]] }
0x1e6a   : > { %p4277_p1 = scmp.ge.s32.totalorder %s5492_s3, 2  ;;  %s3461_s2 = sand.u32 1, %s5493_s6  }
0x1e6b   : > { %s3462_s30 = scalar_lea.sflag [#allocation3], %s3461_s2 }
0x1e6c   : > { %p4274_p2 = pnand %p4277_p1, %p4643_p6 }
0x1e6e   : > { %4435 = dma.done.wait (!%p4274_p2), %s3462_s30, 16  }
0x1e6f   : > { %4437 = vsyncadd (!%p4274_p2), %s3462_s30, 4294967280  ;;  %s5495_s30 = sld [smem:[#allocation10_spill]]  ;;  %s5496_s7 = sld [smem:[#allocation6_spill]] }
0x1e70   : > { %s5497_s4 = sld [smem:[#allocation7_spill]]  ;;  %s5498_s8 = sld [smem:[#allocation11_spill]] }
0x1e75   : > { %p37_p3 = scmp.ge.s32.totalorder %s5495_s30, 4  }
0x1e77   :  { %39 = sbr.rel (!%p37_p3) target bundleno = 17 (0x11), region = 175 }
0x1e7e   :  { %3466 = vsyncpa [#allocation3], 1 }
0x1e7f   :  { %3468 = vsyncpa [#allocation3 + $0x1], 1 }

</bundles_post_ra>
